<compile_context>
chip_gen: v6e
topology: v6e:2x2x1
jax: 0.10.0
libtpu: 0.0.40
codegen_flags: <defaults>
</compile_context>

<pallas_src>
import functools

import jax
import jax.numpy as jnp
from jax.experimental import pallas as pl
from jax.experimental.pallas import tpu as pltpu

BN_EPS = 1e-5
VMEM_LIMIT_BYTES = 32 * 1024 * 1024  # safe on v5e/v6e/v7x; tiles stay well under


def _round_up(x, m):
    return (x + m - 1) // m * m


def _pick_tile(mp, candidates):
    for t in candidates:
        if mp % t == 0:
            return t
    return candidates[-1]


def _conv_tile_m(mp, kp, cp):
    """Largest M tile (divisor of mp) whose double-buffered bf16 patches,
    resident bf16 weights and bf16 outputs fit with 2x headroom in VMEM."""
    tm = 512 if mp % 512 == 0 else 256
    tm = min(tm, mp)
    while tm > 64 and 2 * (2 * tm * kp + 2 * kp * cp + 2 * tm * cp) > VMEM_LIMIT_BYTES // 2:
        tm //= 2
    return tm


def _epi_tile_m(mp, cp, n_row_inputs):
    """Large epilogue tile (>=1-2 MiB blocks) under the VMEM budget."""
    tm = _pick_tile(mp, (2048, 1024, 512, 256))
    while tm > 256 and 2 * (n_row_inputs + 1) * tm * cp * 2 > VMEM_LIMIT_BYTES // 2:
        tm //= 2
    return tm


# ----------------------------------------------------------------------------
# Pallas kernels
# ----------------------------------------------------------------------------
def conv_bn_stats_kernel(p_ref, w_ref, out_ref, stats_ref):
    """One M-tile of acc = patches @ w (bf16 MXU operands, f32 accumulate,
    single full-K pass; weights are VMEM-resident).  Emits the activation in
    bf16 plus per-channel partial sum / sum-of-squares (computed from the f32
    accumulator) for batch-global BatchNorm statistics."""
    acc = jnp.dot(p_ref[...], w_ref[...], preferred_element_type=jnp.float32)
    out_ref[...] = acc.astype(out_ref.dtype)
    stats_ref[...] = jnp.concatenate(
        [jnp.sum(acc, axis=0, keepdims=True),
         jnp.sum(acc * acc, axis=0, keepdims=True)],
        axis=0,
    ).reshape(stats_ref.shape)


def conv_bn_stats_proj_kernel(lo, hi, p_ref, w_ref, ws_ref,
                              out_ref, stats_ref, out_sc_ref, stats_sc_ref):
    """conv1 + fused 1x1 projection shortcut.  The centre tap of the 3x3/pad-1
    patch row (columns [4C:5C]) is exactly x[:, ::stride, ::stride, :]; the
    [lo:hi) window is 128-lane aligned and ws rows outside the tap are zero, so
    the shortcut matmul rides on already-resident patch data."""
    p = p_ref[...]

    acc = jnp.dot(p, w_ref[...], preferred_element_type=jnp.float32)
    out_ref[...] = acc.astype(out_ref.dtype)
    stats_ref[...] = jnp.concatenate(
        [jnp.sum(acc, axis=0, keepdims=True),
         jnp.sum(acc * acc, axis=0, keepdims=True)],
        axis=0,
    ).reshape(stats_ref.shape)

    acc_sc = jnp.dot(p[:, lo:hi], ws_ref[...], preferred_element_type=jnp.float32)
    out_sc_ref[...] = acc_sc.astype(out_sc_ref.dtype)
    stats_sc_ref[...] = jnp.concatenate(
        [jnp.sum(acc_sc, axis=0, keepdims=True),
         jnp.sum(acc_sc * acc_sc, axis=0, keepdims=True)],
        axis=0,
    ).reshape(stats_sc_ref.shape)


def bn_relu_kernel(acc_ref, scale_ref, shift_ref, o_ref):
    """out = relu(acc * scale + shift) — BN folded into one f32 FMA."""
    y = acc_ref[...].astype(jnp.float32) * scale_ref[...] + shift_ref[...]
    o_ref[...] = jnp.maximum(y, 0.0).astype(o_ref.dtype)


def bn_add_relu_kernel(acc_ref, scale_ref, shift_ref, res_ref, o_ref):
    """out = relu(bn(acc) + residual) — identity shortcut."""
    y = (acc_ref[...].astype(jnp.float32) * scale_ref[...] + shift_ref[...]
         + res_ref[...].astype(jnp.float32))
    o_ref[...] = jnp.maximum(y, 0.0).astype(o_ref.dtype)


def bn_bn_add_relu_kernel(acc_ref, scale_ref, shift_ref,
                          sc_ref, scale_sc_ref, shift_sc_ref, o_ref):
    """out = relu(bn(acc_main) + bn(acc_shortcut)) — projection shortcut."""
    y = (acc_ref[...].astype(jnp.float32) * scale_ref[...] + shift_ref[...]
         + sc_ref[...].astype(jnp.float32) * scale_sc_ref[...] + shift_sc_ref[...])
    o_ref[...] = jnp.maximum(y, 0.0).astype(o_ref.dtype)


# ----------------------------------------------------------------------------
# pallas_call wrappers
# ----------------------------------------------------------------------------
def _conv_with_stats(p, w, tm, ws_win=None, win=None):
    """p: (Mp, Kp) bf16, w: (Kp, Cp) bf16 -> (act bf16, stats f32[, act_sc, stats_sc]).
    Single full-K MXU pass per M tile; weights resident (constant index_map)."""
    mp, kp = p.shape
    kp2, cp = w.shape
    assert kp == kp2 and mp % tm == 0
    gm = mp // tm

    row_spec = pl.BlockSpec((tm, cp), lambda i: (i, 0))
    stat_spec = pl.BlockSpec((1, 2, cp), lambda i: (i, 0, 0))
    in_specs = [
        pl.BlockSpec((tm, kp), lambda i: (i, 0)),
        pl.BlockSpec((kp, cp), lambda i: (0, 0)),   # VMEM-resident weights
    ]
    out_specs = [row_spec, stat_spec]
    out_shape = [jax.ShapeDtypeStruct((mp, cp), jnp.bfloat16),
                 jax.ShapeDtypeStruct((gm, 2, cp), jnp.float32)]
    flops = 2 * mp * kp * cp
    bytes_in = (mp * kp + kp * cp) * 2
    bytes_out = mp * cp * 2 + gm * 2 * cp * 4
    args = (p, w)

    if ws_win is None:
        kernel = conv_bn_stats_kernel
    else:
        lo, hi = win
        kernel = functools.partial(conv_bn_stats_proj_kernel, lo, hi)
        in_specs.append(pl.BlockSpec(ws_win.shape, lambda i: (0, 0)))
        out_specs += [row_spec, stat_spec]
        out_shape += [jax.ShapeDtypeStruct((mp, cp), jnp.bfloat16),
                      jax.ShapeDtypeStruct((gm, 2, cp), jnp.float32)]
        flops += 2 * mp * ws_win.shape[0] * cp
        bytes_in += ws_win.size * 2
        bytes_out *= 2
        args = (p, w, ws_win)

    cost = pl.CostEstimate(flops=flops, transcendentals=0,
                           bytes_accessed=bytes_in + bytes_out)
    return pl.pallas_call(
        kernel,
        grid_spec=pltpu.PrefetchScalarGridSpec(
            num_scalar_prefetch=0,
            grid=(gm,),
            in_specs=in_specs,
            out_specs=out_specs,
        ),
        out_shape=tuple(out_shape),
        compiler_params=pltpu.CompilerParams(
            dimension_semantics=("parallel",),
            vmem_limit_bytes=VMEM_LIMIT_BYTES,
        ),
        cost_estimate=cost,
    )(*args)


def _apply_call(kernel, out_dtype, acc, *args):
    """Tiled elementwise epilogue: BN affine (+ residual add) + ReLU, using a
    large epilogue-specific M tile for lane-dense, near-roofline streaming."""
    mp, cp = acc.shape
    n_rows = 1 + sum(1 for a in args if a.shape[0] != 1)
    tm = _epi_tile_m(mp, cp, n_rows)
    gm = mp // tm
    row_spec = pl.BlockSpec((tm, cp), lambda i: (i, 0))
    vec_spec = pl.BlockSpec((1, cp), lambda i: (0, 0))
    in_specs = [row_spec] + [vec_spec if a.shape[0] == 1 else row_spec for a in args]
    return pl.pallas_call(
        kernel,
        grid_spec=pltpu.PrefetchScalarGridSpec(
            num_scalar_prefetch=0,
            grid=(gm,),
            in_specs=in_specs,
            out_specs=row_spec,
        ),
        out_shape=jax.ShapeDtypeStruct((mp, cp), out_dtype),
        compiler_params=pltpu.CompilerParams(
            dimension_semantics=("parallel",),
            vmem_limit_bytes=VMEM_LIMIT_BYTES,
        ),
    )(acc, *args)


# ----------------------------------------------------------------------------
# JAX glue: im2col, padding, BN folding
# ----------------------------------------------------------------------------
def _im2col_3x3(x_nhwc, stride):
    """3x3 patches with padding=1. Returns ((N*Ho*Wo, 9*C), Ho, Wo)."""
    n, h, w, c = x_nhwc.shape
    xp = jnp.pad(x_nhwc, ((0, 0), (1, 1), (1, 1), (0, 0)))
    ho = (h + 2 - 3) // stride + 1
    wo = (w + 2 - 3) // stride + 1
    cols = []
    for dy in range(3):
        for dx in range(3):
            cols.append(xp[:, dy:dy + stride * (ho - 1) + 1:stride,
                            dx:dx + stride * (wo - 1) + 1:stride, :])
    patches = jnp.concatenate(cols, axis=-1)  # (N, Ho, Wo, 9*C)
    return patches.reshape(n * ho * wo, 9 * c), ho, wo


def _pad2(a, rows, cols):
    return jnp.pad(a, ((0, rows - a.shape[0]), (0, cols - a.shape[1])))


def _pad_vec(v, cp, fill):
    return jnp.pad(v.astype(jnp.float32), (0, cp - v.shape[0]),
                   constant_values=fill)


def _bn_fold(stats, count, gamma, beta):
    """Fold batch-global sum / sumsq into per-channel (scale, shift).
    Zero-padded rows/columns contribute exactly zero to sum/sumsq, so dividing
    by the real row count keeps the statistics exact."""
    s = jnp.sum(stats[:, 0, :], axis=0)
    ss = jnp.sum(stats[:, 1, :], axis=0)
    mean = s / count
    var = ss / count - mean * mean
    scale = gamma * jax.lax.rsqrt(var + BN_EPS)
    shift = beta - mean * scale
    return scale[None, :], shift[None, :]


def init_basic_block_params(key, in_planes, planes):
    k1, k2, k3 = jax.random.split(key, 3)
    return {
        "w1": 0.1 * jax.random.normal(k1, (3, 3, in_planes, planes), jnp.float32),
        "g1": jnp.ones((planes,), jnp.float32),
        "b1": jnp.zeros((planes,), jnp.float32),
        "w2": 0.1 * jax.random.normal(k2, (3, 3, planes, planes), jnp.float32),
        "g2": jnp.ones((planes,), jnp.float32),
        "b2": jnp.zeros((planes,), jnp.float32),
        "ws": 0.1 * jax.random.normal(k3, (in_planes, planes), jnp.float32),
        "gs": jnp.ones((planes,), jnp.float32),
        "bs": jnp.zeros((planes,), jnp.float32),
    }


# ----------------------------------------------------------------------------
# BasicBlock forward
# ----------------------------------------------------------------------------
@functools.partial(jax.jit, static_argnames=("in_planes", "planes", "stride"))
def basic_block_forward(x_nchw, params, *, in_planes, planes, stride=1):
    n, c, h, w = x_nchw.shape
    assert c == in_planes
    x_bf = jnp.transpose(x_nchw, (0, 2, 3, 1)).astype(jnp.bfloat16)  # NCHW -> NHWC

    ho = (h + 2 - 3) // stride + 1
    wo = (w + 2 - 3) // stride + 1
    m = n * ho * wo
    mp = _round_up(m, 256)
    cp = _round_up(planes, 128)

    g1 = _pad_vec(params["g1"], cp, 1.0)
    b1 = _pad_vec(params["b1"], cp, 0.0)
    g2 = _pad_vec(params["g2"], cp, 1.0)
    b2 = _pad_vec(params["b2"], cp, 0.0)

    use_proj = (stride != 1) or (in_planes != planes)

    # --- conv1 (3x3, stride) + bn1-stats [+ fused 1x1 projection shortcut] ---
    k1 = 9 * in_planes
    kp1 = _round_up(k1, 128)
    tm1 = _conv_tile_m(mp, kp1, cp)
    p1, _, _ = _im2col_3x3(x_bf, stride)
    p1 = _pad2(p1, mp, kp1)
    w1 = _pad2(params["w1"].reshape(k1, planes).astype(jnp.bfloat16), kp1, cp)

    if use_proj:
        # lane-aligned window covering the centre tap (columns [4C:5C))
        lo = (4 * in_planes) // 128 * 128
        hi = min(_round_up(5 * in_planes, 128), kp1)
        ws_win = jnp.zeros((hi - lo, planes), jnp.float32)
        ws_win = ws_win.at[4 * in_planes - lo:5 * in_planes - lo].set(params["ws"])
        ws_win = _pad2(ws_win.astype(jnp.bfloat16), hi - lo, cp)
        acc1, st1, acc_sc, st_sc = _conv_with_stats(p1, w1, tm1,
                                                    ws_win=ws_win, win=(lo, hi))
    else:
        acc1, st1 = _conv_with_stats(p1, w1, tm1)

    s1, sh1 = _bn_fold(st1, float(m), g1, b1)
    out1 = _apply_call(bn_relu_kernel, jnp.bfloat16, acc1, s1, sh1)

    # --- conv2 (3x3, stride 1) on out1 + bn2-stats ---
    out1_nhwc = out1[:m, :planes].reshape(n, ho, wo, planes)
    k2 = 9 * planes
    kp2 = _round_up(k2, 128)
    tm2 = _conv_tile_m(mp, kp2, cp)
    p2, _, _ = _im2col_3x3(out1_nhwc, 1)
    p2 = _pad2(p2, mp, kp2)
    w2 = _pad2(params["w2"].reshape(k2, planes).astype(jnp.bfloat16), kp2, cp)
    acc2, st2 = _conv_with_stats(p2, w2, tm2)
    s2, sh2 = _bn_fold(st2, float(m), g2, b2)

    # --- shortcut + add + relu ---
    if use_proj:
        gs = _pad_vec(params["gs"], cp, 1.0)
        bs = _pad_vec(params["bs"], cp, 0.0)
        s_sc, sh_sc = _bn_fold(st_sc, float(m), gs, bs)
        out = _apply_call(bn_bn_add_relu_kernel, jnp.bfloat16,
                          acc2, s2, sh2, acc_sc, s_sc, sh_sc)
    else:
        x_id = _pad2(x_bf.reshape(m, in_planes), mp, cp)
        out = _apply_call(bn_add_relu_kernel, jnp.bfloat16, acc2, s2, sh2, x_id)

    out_nhwc = out[:m, :planes].reshape(n, ho, wo, planes)
    return jnp.transpose(out_nhwc, (0, 3, 1, 2)).astype(jnp.float32)  # NCHW


# ----------------------------------------------------------------------------
# Pure-JAX reference (training-mode BatchNorm semantics)
# ----------------------------------------------------------------------------
def reference_block(x, params, in_planes, planes, stride):
    dn = ("NCHW", "HWIO", "NCHW")
    prec = jax.lax.Precision.HIGHEST

    def bn(t, gamma, beta):
        mean = jnp.mean(t, axis=(0, 2, 3), keepdims=True)
        var = jnp.mean(jnp.square(t - mean), axis=(0, 2, 3), keepdims=True)
        return ((t - mean) * jax.lax.rsqrt(var + BN_EPS)
                * gamma.reshape(1, -1, 1, 1) + beta.reshape(1, -1, 1, 1))

    out = jax.lax.conv_general_dilated(x, params["w1"], (stride, stride),
                                       ((1, 1), (1, 1)), dimension_numbers=dn,
                                       precision=prec)
    out = jax.nn.relu(bn(out, params["g1"], params["b1"]))
    out = jax.lax.conv_general_dilated(out, params["w2"], (1, 1),
                                       ((1, 1), (1, 1)), dimension_numbers=dn,
                                       precision=prec)
    out = bn(out, params["g2"], params["b2"])
    if stride != 1 or in_planes != planes:
        ws = params["ws"].reshape(1, 1, in_planes, planes)
        sc = jax.lax.conv_general_dilated(x, ws, (stride, stride), "VALID",
                                          dimension_numbers=dn, precision=prec)
        sc = bn(sc, params["gs"], params["bs"])
    else:
        sc = x
    return jax.nn.relu(out + sc)


# ----------------------------------------------------------------------------
if __name__ == "__main__":
    key = jax.random.PRNGKey(0)

    # Config A: projection shortcut (channel change + stride 2).
    kx, kp, key = jax.random.split(key, 3)
    x = jax.random.normal(kx, (2, 4, 16, 16), jnp.float32)
    params = init_basic_block_params(kp, 4, 8)
    out = basic_block_forward(x, params, in_planes=4, planes=8, stride=2)
    out = jax.block_until_ready(out)
    assert out.shape == (2, 8, 8, 8), out.shape
    assert bool(jnp.all(jnp.isfinite(out)))
    ref = reference_block(x, params, 4, 8, 2)
    assert float(jnp.max(jnp.abs(out - ref))) < 0.1

    # Config B: identity shortcut (same channels, stride 1).
    kx, kp, key = jax.random.split(key, 3)
    x2 = jax.random.normal(kx, (2, 8, 16, 16), jnp.float32)
    params2 = init_basic_block_params(kp, 8, 8)
    out2 = basic_block_forward(x2, params2, in_planes=8, planes=8, stride=1)
    out2 = jax.block_until_ready(out2)
    assert out2.shape == (2, 8, 16, 16), out2.shape
    assert bool(jnp.all(jnp.isfinite(out2)))
    ref2 = reference_block(x2, params2, 8, 8, 1)
    assert float(jnp.max(jnp.abs(out2 - ref2))) < 0.1

    print("KERNEL_OK")
</pallas_src>

<mosaic_0001>
module attributes {stable_mosaic.version = 11 : i64} {
  func.func @conv_bn_stats_proj_kernel(%arg0: i32, %arg1: memref<256x128xbf16, #tpu.memory_space<vmem>>, %arg2: memref<128x128xbf16, #tpu.memory_space<vmem>>, %arg3: memref<128x128xbf16, #tpu.memory_space<vmem>>, %arg4: memref<256x128xbf16, #tpu.memory_space<vmem>>, %arg5: memref<1x2x128xf32, #tpu.memory_space<vmem>>, %arg6: memref<256x128xbf16, #tpu.memory_space<vmem>>, %arg7: memref<1x2x128xf32, #tpu.memory_space<vmem>>) attributes {dimension_semantics = [#tpu.dimension_semantics<parallel>], iteration_bounds = array<i64: 1>, scalar_prefetch = 0 : i64, scratch_operands = 0 : i64, tpu.core_type = #tpu.core_type<tc>, window_params = [{transform_indices = @transform_0, window_bounds = array<i64: 256, 128>}, {pipeline_mode = #tpu.pipeline_mode<synchronous>, transform_indices = @transform_1, window_bounds = array<i64: 128, 128>}, {pipeline_mode = #tpu.pipeline_mode<synchronous>, transform_indices = @transform_2, window_bounds = array<i64: 128, 128>}, {transform_indices = @transform_3, window_bounds = array<i64: 256, 128>}, {transform_indices = @transform_4, window_bounds = array<i64: 1, 2, 128>}, {transform_indices = @transform_5, window_bounds = array<i64: 256, 128>}, {transform_indices = @transform_6, window_bounds = array<i64: 1, 2, 128>}]} {
    %c0 = arith.constant 0 : index
    %c0_0 = arith.constant 0 : index
    %0 = vector.load %arg1[%c0, %c0_0] : memref<256x128xbf16, #tpu.memory_space<vmem>>, vector<256x128xbf16>
    %c0_1 = arith.constant 0 : index
    %c0_2 = arith.constant 0 : index
    %1 = vector.load %arg2[%c0_1, %c0_2] : memref<128x128xbf16, #tpu.memory_space<vmem>>, vector<128x128xbf16>
    %cst = arith.constant dense<0.000000e+00> : vector<256x128xf32>
    %2 = tpu.matmul %0, %1, %cst {dimension_numbers = #tpu.dot_dimension_numbers<[1], [0], [0], [1], [0, 0, 1, 1], [], []>} : vector<256x128xbf16>, vector<128x128xbf16>, vector<256x128xf32> -> vector<256x128xf32>
    %3 = arith.truncf %2 : vector<256x128xf32> to vector<256x128xbf16>
    %c0_3 = arith.constant 0 : index
    %c0_4 = arith.constant 0 : index
    %4 = vector.load %arg4[%c0_3, %c0_4] : memref<256x128xbf16, #tpu.memory_space<vmem>>, vector<256x128xbf16>
    tpu.vector_store %arg4[%c0_3, %c0_4], %3 {strides = array<i32>} : memref<256x128xbf16, #tpu.memory_space<vmem>>, vector<256x128xbf16>,
    %cst_5 = arith.constant dense<0.000000e+00> : vector<128xf32>
    %5 = vector.multi_reduction <add>, %2, %cst_5 [0] : vector<256x128xf32> to vector<128xf32>
    %6 = vector.shape_cast %5 : vector<128xf32> to vector<1x128xf32>
    %7 = arith.mulf %2, %2 : vector<256x128xf32>
    %cst_6 = arith.constant dense<0.000000e+00> : vector<128xf32>
    %8 = vector.multi_reduction <add>, %7, %cst_6 [0] : vector<256x128xf32> to vector<128xf32>
    %9 = vector.shape_cast %8 : vector<128xf32> to vector<1x128xf32>
    %10 = tpu.concatenate %6, %9 in 0 : vector<1x128xf32>, vector<1x128xf32> -> vector<2x128xf32>
    %11 = vector.shape_cast %10 : vector<2x128xf32> to vector<1x2x128xf32>
    %c0_7 = arith.constant 0 : index
    %c0_8 = arith.constant 0 : index
    %c0_9 = arith.constant 0 : index
    %12 = vector.load %arg5[%c0_7, %c0_8, %c0_9] : memref<1x2x128xf32, #tpu.memory_space<vmem>>, vector<1x2x128xf32>
    tpu.vector_store %arg5[%c0_7, %c0_8, %c0_9], %11 {strides = array<i32>} : memref<1x2x128xf32, #tpu.memory_space<vmem>>, vector<1x2x128xf32>,
    %c0_10 = arith.constant 0 : index
    %c0_11 = arith.constant 0 : index
    %13 = vector.load %arg3[%c0_10, %c0_11] : memref<128x128xbf16, #tpu.memory_space<vmem>>, vector<128x128xbf16>
    %cst_12 = arith.constant dense<0.000000e+00> : vector<256x128xf32>
    %14 = tpu.matmul %0, %13, %cst_12 {dimension_numbers = #tpu.dot_dimension_numbers<[1], [0], [0], [1], [0, 0, 1, 1], [], []>} : vector<256x128xbf16>, vector<128x128xbf16>, vector<256x128xf32> -> vector<256x128xf32>
    %15 = arith.truncf %14 : vector<256x128xf32> to vector<256x128xbf16>
    %c0_13 = arith.constant 0 : index
    %c0_14 = arith.constant 0 : index
    %16 = vector.load %arg6[%c0_13, %c0_14] : memref<256x128xbf16, #tpu.memory_space<vmem>>, vector<256x128xbf16>
    tpu.vector_store %arg6[%c0_13, %c0_14], %15 {strides = array<i32>} : memref<256x128xbf16, #tpu.memory_space<vmem>>, vector<256x128xbf16>,
    %cst_15 = arith.constant dense<0.000000e+00> : vector<128xf32>
    %17 = vector.multi_reduction <add>, %14, %cst_15 [0] : vector<256x128xf32> to vector<128xf32>
    %18 = vector.shape_cast %17 : vector<128xf32> to vector<1x128xf32>
    %19 = arith.mulf %14, %14 : vector<256x128xf32>
    %cst_16 = arith.constant dense<0.000000e+00> : vector<128xf32>
    %20 = vector.multi_reduction <add>, %19, %cst_16 [0] : vector<256x128xf32> to vector<128xf32>
    %21 = vector.shape_cast %20 : vector<128xf32> to vector<1x128xf32>
    %22 = tpu.concatenate %18, %21 in 0 : vector<1x128xf32>, vector<1x128xf32> -> vector<2x128xf32>
    %23 = vector.shape_cast %22 : vector<2x128xf32> to vector<1x2x128xf32>
    %c0_17 = arith.constant 0 : index
    %c0_18 = arith.constant 0 : index
    %c0_19 = arith.constant 0 : index
    %24 = vector.load %arg7[%c0_17, %c0_18, %c0_19] : memref<1x2x128xf32, #tpu.memory_space<vmem>>, vector<1x2x128xf32>
    tpu.vector_store %arg7[%c0_17, %c0_18, %c0_19], %23 {strides = array<i32>} : memref<1x2x128xf32, #tpu.memory_space<vmem>>, vector<1x2x128xf32>,
    return
  }
  func.func @transform_0(%arg0: i32) -> (i32, i32) {
    %c0_i32 = arith.constant 0 : i32
    %c0_i32_0 = arith.constant 0 : i32
    return %arg0, %c0_i32 : i32, i32
  }
  func.func @transform_1(%arg0: i32) -> (i32, i32) {
    %c0_i32 = arith.constant 0 : i32
    %c0_i32_0 = arith.constant 0 : i32
    %c0_i32_1 = arith.constant 0 : i32
    return %c0_i32, %c0_i32_0 : i32, i32
  }
  func.func @transform_2(%arg0: i32) -> (i32, i32) {
    %c0_i32 = arith.constant 0 : i32
    %c0_i32_0 = arith.constant 0 : i32
    %c0_i32_1 = arith.constant 0 : i32
    return %c0_i32, %c0_i32_0 : i32, i32
  }
  func.func @transform_3(%arg0: i32) -> (i32, i32) {
    %c0_i32 = arith.constant 0 : i32
    %c0_i32_0 = arith.constant 0 : i32
    return %arg0, %c0_i32 : i32, i32
  }
  func.func @transform_4(%arg0: i32) -> (i32, i32, i32) {
    %c0_i32 = arith.constant 0 : i32
    %c0_i32_0 = arith.constant 0 : i32
    %c0_i32_1 = arith.constant 0 : i32
    return %arg0, %c0_i32, %c0_i32_0 : i32, i32, i32
  }
  func.func @transform_5(%arg0: i32) -> (i32, i32) {
    %c0_i32 = arith.constant 0 : i32
    %c0_i32_0 = arith.constant 0 : i32
    return %arg0, %c0_i32 : i32, i32
  }
  func.func @transform_6(%arg0: i32) -> (i32, i32, i32) {
    %c0_i32 = arith.constant 0 : i32
    %c0_i32_0 = arith.constant 0 : i32
    %c0_i32_1 = arith.constant 0 : i32
    return %arg0, %c0_i32, %c0_i32_0 : i32, i32, i32
  }
}

module attributes {stable_mosaic.version = 11 : i64} {
  func.func @bn_relu_kernel(%arg0: i32, %arg1: memref<256x128xbf16, #tpu.memory_space<vmem>>, %arg2: memref<1x128xf32, #tpu.memory_space<vmem>>, %arg3: memref<1x128xf32, #tpu.memory_space<vmem>>, %arg4: memref<256x128xbf16, #tpu.memory_space<vmem>>) attributes {dimension_semantics = [#tpu.dimension_semantics<parallel>], iteration_bounds = array<i64: 1>, scalar_prefetch = 0 : i64, scratch_operands = 0 : i64, tpu.core_type = #tpu.core_type<tc>, window_params = [{transform_indices = @transform_0, window_bounds = array<i64: 256, 128>}, {pipeline_mode = #tpu.pipeline_mode<synchronous>, transform_indices = @transform_1, window_bounds = array<i64: 1, 128>}, {pipeline_mode = #tpu.pipeline_mode<synchronous>, transform_indices = @transform_2, window_bounds = array<i64: 1, 128>}, {transform_indices = @transform_3, window_bounds = array<i64: 256, 128>}]} {
    %c0 = arith.constant 0 : index
    %c0_0 = arith.constant 0 : index
    %0 = vector.load %arg1[%c0, %c0_0] : memref<256x128xbf16, #tpu.memory_space<vmem>>, vector<256x128xbf16>
    %1 = arith.extf %0 : vector<256x128xbf16> to vector<256x128xf32>
    %c0_1 = arith.constant 0 : index
    %c0_2 = arith.constant 0 : index
    %2 = vector.load %arg2[%c0_1, %c0_2] : memref<1x128xf32, #tpu.memory_space<vmem>>, vector<1x128xf32>
    %3 = vector.broadcast %2 : vector<1x128xf32> to vector<256x128xf32>
    %4 = arith.mulf %1, %3 : vector<256x128xf32>
    %c0_3 = arith.constant 0 : index
    %c0_4 = arith.constant 0 : index
    %5 = vector.load %arg3[%c0_3, %c0_4] : memref<1x128xf32, #tpu.memory_space<vmem>>, vector<1x128xf32>
    %6 = vector.broadcast %5 : vector<1x128xf32> to vector<256x128xf32>
    %7 = arith.addf %4, %6 : vector<256x128xf32>
    %cst = arith.constant 0.000000e+00 : f32
    %8 = vector.broadcast %cst : f32 to vector<256x128xf32>
    %9 = arith.maximumf %7, %8 : vector<256x128xf32>
    %10 = arith.truncf %9 : vector<256x128xf32> to vector<256x128xbf16>
    %c0_5 = arith.constant 0 : index
    %c0_6 = arith.constant 0 : index
    %11 = vector.load %arg4[%c0_5, %c0_6] : memref<256x128xbf16, #tpu.memory_space<vmem>>, vector<256x128xbf16>
    tpu.vector_store %arg4[%c0_5, %c0_6], %10 {strides = array<i32>} : memref<256x128xbf16, #tpu.memory_space<vmem>>, vector<256x128xbf16>,
    return
  }
  func.func @transform_0(%arg0: i32) -> (i32, i32) {
    %c0_i32 = arith.constant 0 : i32
    %c0_i32_0 = arith.constant 0 : i32
    return %arg0, %c0_i32 : i32, i32
  }
  func.func @transform_1(%arg0: i32) -> (i32, i32) {
    %c0_i32 = arith.constant 0 : i32
    %c0_i32_0 = arith.constant 0 : i32
    %c0_i32_1 = arith.constant 0 : i32
    return %c0_i32, %c0_i32_0 : i32, i32
  }
  func.func @transform_2(%arg0: i32) -> (i32, i32) {
    %c0_i32 = arith.constant 0 : i32
    %c0_i32_0 = arith.constant 0 : i32
    %c0_i32_1 = arith.constant 0 : i32
    return %c0_i32, %c0_i32_0 : i32, i32
  }
  func.func @transform_3(%arg0: i32) -> (i32, i32) {
    %c0_i32 = arith.constant 0 : i32
    %c0_i32_0 = arith.constant 0 : i32
    return %arg0, %c0_i32 : i32, i32
  }
}

module attributes {stable_mosaic.version = 11 : i64} {
  func.func @conv_bn_stats_kernel(%arg0: i32, %arg1: memref<256x128xbf16, #tpu.memory_space<vmem>>, %arg2: memref<128x128xbf16, #tpu.memory_space<vmem>>, %arg3: memref<256x128xbf16, #tpu.memory_space<vmem>>, %arg4: memref<1x2x128xf32, #tpu.memory_space<vmem>>) attributes {dimension_semantics = [#tpu.dimension_semantics<parallel>], iteration_bounds = array<i64: 1>, scalar_prefetch = 0 : i64, scratch_operands = 0 : i64, tpu.core_type = #tpu.core_type<tc>, window_params = [{transform_indices = @transform_0, window_bounds = array<i64: 256, 128>}, {pipeline_mode = #tpu.pipeline_mode<synchronous>, transform_indices = @transform_1, window_bounds = array<i64: 128, 128>}, {transform_indices = @transform_2, window_bounds = array<i64: 256, 128>}, {transform_indices = @transform_3, window_bounds = array<i64: 1, 2, 128>}]} {
    %c0 = arith.constant 0 : index
    %c0_0 = arith.constant 0 : index
    %0 = vector.load %arg1[%c0, %c0_0] : memref<256x128xbf16, #tpu.memory_space<vmem>>, vector<256x128xbf16>
    %c0_1 = arith.constant 0 : index
    %c0_2 = arith.constant 0 : index
    %1 = vector.load %arg2[%c0_1, %c0_2] : memref<128x128xbf16, #tpu.memory_space<vmem>>, vector<128x128xbf16>
    %cst = arith.constant dense<0.000000e+00> : vector<256x128xf32>
    %2 = tpu.matmul %0, %1, %cst {dimension_numbers = #tpu.dot_dimension_numbers<[1], [0], [0], [1], [0, 0, 1, 1], [], []>} : vector<256x128xbf16>, vector<128x128xbf16>, vector<256x128xf32> -> vector<256x128xf32>
    %3 = arith.truncf %2 : vector<256x128xf32> to vector<256x128xbf16>
    %c0_3 = arith.constant 0 : index
    %c0_4 = arith.constant 0 : index
    %4 = vector.load %arg3[%c0_3, %c0_4] : memref<256x128xbf16, #tpu.memory_space<vmem>>, vector<256x128xbf16>
    tpu.vector_store %arg3[%c0_3, %c0_4], %3 {strides = array<i32>} : memref<256x128xbf16, #tpu.memory_space<vmem>>, vector<256x128xbf16>,
    %cst_5 = arith.constant dense<0.000000e+00> : vector<128xf32>
    %5 = vector.multi_reduction <add>, %2, %cst_5 [0] : vector<256x128xf32> to vector<128xf32>
    %6 = vector.shape_cast %5 : vector<128xf32> to vector<1x128xf32>
    %7 = arith.mulf %2, %2 : vector<256x128xf32>
    %cst_6 = arith.constant dense<0.000000e+00> : vector<128xf32>
    %8 = vector.multi_reduction <add>, %7, %cst_6 [0] : vector<256x128xf32> to vector<128xf32>
    %9 = vector.shape_cast %8 : vector<128xf32> to vector<1x128xf32>
    %10 = tpu.concatenate %6, %9 in 0 : vector<1x128xf32>, vector<1x128xf32> -> vector<2x128xf32>
    %11 = vector.shape_cast %10 : vector<2x128xf32> to vector<1x2x128xf32>
    %c0_7 = arith.constant 0 : index
    %c0_8 = arith.constant 0 : index
    %c0_9 = arith.constant 0 : index
    %12 = vector.load %arg4[%c0_7, %c0_8, %c0_9] : memref<1x2x128xf32, #tpu.memory_space<vmem>>, vector<1x2x128xf32>
    tpu.vector_store %arg4[%c0_7, %c0_8, %c0_9], %11 {strides = array<i32>} : memref<1x2x128xf32, #tpu.memory_space<vmem>>, vector<1x2x128xf32>,
    return
  }
  func.func @transform_0(%arg0: i32) -> (i32, i32) {
    %c0_i32 = arith.constant 0 : i32
    %c0_i32_0 = arith.constant 0 : i32
    return %arg0, %c0_i32 : i32, i32
  }
  func.func @transform_1(%arg0: i32) -> (i32, i32) {
    %c0_i32 = arith.constant 0 : i32
    %c0_i32_0 = arith.constant 0 : i32
    %c0_i32_1 = arith.constant 0 : i32
    return %c0_i32, %c0_i32_0 : i32, i32
  }
  func.func @transform_2(%arg0: i32) -> (i32, i32) {
    %c0_i32 = arith.constant 0 : i32
    %c0_i32_0 = arith.constant 0 : i32
    return %arg0, %c0_i32 : i32, i32
  }
  func.func @transform_3(%arg0: i32) -> (i32, i32, i32) {
    %c0_i32 = arith.constant 0 : i32
    %c0_i32_0 = arith.constant 0 : i32
    %c0_i32_1 = arith.constant 0 : i32
    return %arg0, %c0_i32, %c0_i32_0 : i32, i32, i32
  }
}

module attributes {stable_mosaic.version = 11 : i64} {
  func.func @bn_bn_add_relu_kernel(%arg0: i32, %arg1: memref<256x128xbf16, #tpu.memory_space<vmem>>, %arg2: memref<1x128xf32, #tpu.memory_space<vmem>>, %arg3: memref<1x128xf32, #tpu.memory_space<vmem>>, %arg4: memref<256x128xbf16, #tpu.memory_space<vmem>>, %arg5: memref<1x128xf32, #tpu.memory_space<vmem>>, %arg6: memref<1x128xf32, #tpu.memory_space<vmem>>, %arg7: memref<256x128xbf16, #tpu.memory_space<vmem>>) attributes {dimension_semantics = [#tpu.dimension_semantics<parallel>], iteration_bounds = array<i64: 1>, scalar_prefetch = 0 : i64, scratch_operands = 0 : i64, tpu.core_type = #tpu.core_type<tc>, window_params = [{transform_indices = @transform_0, window_bounds = array<i64: 256, 128>}, {pipeline_mode = #tpu.pipeline_mode<synchronous>, transform_indices = @transform_1, window_bounds = array<i64: 1, 128>}, {pipeline_mode = #tpu.pipeline_mode<synchronous>, transform_indices = @transform_2, window_bounds = array<i64: 1, 128>}, {transform_indices = @transform_3, window_bounds = array<i64: 256, 128>}, {pipeline_mode = #tpu.pipeline_mode<synchronous>, transform_indices = @transform_4, window_bounds = array<i64: 1, 128>}, {pipeline_mode = #tpu.pipeline_mode<synchronous>, transform_indices = @transform_5, window_bounds = array<i64: 1, 128>}, {transform_indices = @transform_6, window_bounds = array<i64: 256, 128>}]} {
    %c0 = arith.constant 0 : index
    %c0_0 = arith.constant 0 : index
    %0 = vector.load %arg1[%c0, %c0_0] : memref<256x128xbf16, #tpu.memory_space<vmem>>, vector<256x128xbf16>
    %1 = arith.extf %0 : vector<256x128xbf16> to vector<256x128xf32>
    %c0_1 = arith.constant 0 : index
    %c0_2 = arith.constant 0 : index
    %2 = vector.load %arg2[%c0_1, %c0_2] : memref<1x128xf32, #tpu.memory_space<vmem>>, vector<1x128xf32>
    %3 = vector.broadcast %2 : vector<1x128xf32> to vector<256x128xf32>
    %4 = arith.mulf %1, %3 : vector<256x128xf32>
    %c0_3 = arith.constant 0 : index
    %c0_4 = arith.constant 0 : index
    %5 = vector.load %arg3[%c0_3, %c0_4] : memref<1x128xf32, #tpu.memory_space<vmem>>, vector<1x128xf32>
    %6 = vector.broadcast %5 : vector<1x128xf32> to vector<256x128xf32>
    %7 = arith.addf %4, %6 : vector<256x128xf32>
    %c0_5 = arith.constant 0 : index
    %c0_6 = arith.constant 0 : index
    %8 = vector.load %arg4[%c0_5, %c0_6] : memref<256x128xbf16, #tpu.memory_space<vmem>>, vector<256x128xbf16>
    %9 = arith.extf %8 : vector<256x128xbf16> to vector<256x128xf32>
    %c0_7 = arith.constant 0 : index
    %c0_8 = arith.constant 0 : index
    %10 = vector.load %arg5[%c0_7, %c0_8] : memref<1x128xf32, #tpu.memory_space<vmem>>, vector<1x128xf32>
    %11 = vector.broadcast %10 : vector<1x128xf32> to vector<256x128xf32>
    %12 = arith.mulf %9, %11 : vector<256x128xf32>
    %13 = arith.addf %7, %12 : vector<256x128xf32>
    %c0_9 = arith.constant 0 : index
    %c0_10 = arith.constant 0 : index
    %14 = vector.load %arg6[%c0_9, %c0_10] : memref<1x128xf32, #tpu.memory_space<vmem>>, vector<1x128xf32>
    %15 = vector.broadcast %14 : vector<1x128xf32> to vector<256x128xf32>
    %16 = arith.addf %13, %15 : vector<256x128xf32>
    %cst = arith.constant 0.000000e+00 : f32
    %17 = vector.broadcast %cst : f32 to vector<256x128xf32>
    %18 = arith.maximumf %16, %17 : vector<256x128xf32>
    %19 = arith.truncf %18 : vector<256x128xf32> to vector<256x128xbf16>
    %c0_11 = arith.constant 0 : index
    %c0_12 = arith.constant 0 : index
    %20 = vector.load %arg7[%c0_11, %c0_12] : memref<256x128xbf16, #tpu.memory_space<vmem>>, vector<256x128xbf16>
    tpu.vector_store %arg7[%c0_11, %c0_12], %19 {strides = array<i32>} : memref<256x128xbf16, #tpu.memory_space<vmem>>, vector<256x128xbf16>,
    return
  }
  func.func @transform_0(%arg0: i32) -> (i32, i32) {
    %c0_i32 = arith.constant 0 : i32
    %c0_i32_0 = arith.constant 0 : i32
    return %arg0, %c0_i32 : i32, i32
  }
  func.func @transform_1(%arg0: i32) -> (i32, i32) {
    %c0_i32 = arith.constant 0 : i32
    %c0_i32_0 = arith.constant 0 : i32
    %c0_i32_1 = arith.constant 0 : i32
    return %c0_i32, %c0_i32_0 : i32, i32
  }
  func.func @transform_2(%arg0: i32) -> (i32, i32) {
    %c0_i32 = arith.constant 0 : i32
    %c0_i32_0 = arith.constant 0 : i32
    %c0_i32_1 = arith.constant 0 : i32
    return %c0_i32, %c0_i32_0 : i32, i32
  }
  func.func @transform_3(%arg0: i32) -> (i32, i32) {
    %c0_i32 = arith.constant 0 : i32
    %c0_i32_0 = arith.constant 0 : i32
    return %arg0, %c0_i32 : i32, i32
  }
  func.func @transform_4(%arg0: i32) -> (i32, i32) {
    %c0_i32 = arith.constant 0 : i32
    %c0_i32_0 = arith.constant 0 : i32
    %c0_i32_1 = arith.constant 0 : i32
    return %c0_i32, %c0_i32_0 : i32, i32
  }
  func.func @transform_5(%arg0: i32) -> (i32, i32) {
    %c0_i32 = arith.constant 0 : i32
    %c0_i32_0 = arith.constant 0 : i32
    %c0_i32_1 = arith.constant 0 : i32
    return %c0_i32, %c0_i32_0 : i32, i32
  }
  func.func @transform_6(%arg0: i32) -> (i32, i32) {
    %c0_i32 = arith.constant 0 : i32
    %c0_i32_0 = arith.constant 0 : i32
    return %arg0, %c0_i32 : i32, i32
  }
}

</mosaic_0001>

<bundles_post_ra>
// kernel: basic_block_forward.5
= control target key start
LH: loop header
LB: loop body
LE: loop exit
PB: predicated region body
PF: predicated region fallthrough
CT: control target
= control target key end

     0   :  { %s782_s0 = inlined_call_operand.vmem [shape: bf16[256,128], index: 0, kind: input, shape index: {}]   ;;  %s783_s1 = inlined_call_operand.vmem [shape: f32[1,128], index: 1, kind: input, shape index: {}]   ;;  %s784_s2 = inlined_call_operand.vmem [shape: f32[1,128], index: 2, kind: input, shape index: {}]   ;;  %s785_s3 = inlined_call_operand.vmem [shape: bf16[256,128], index: 3, kind: output, shape index: {}]  }
   0x1   :  { %v419_v0 = vld [vmem:[%s782_s0] sm:$0xff]   ;;  %v562_v4 = vld [vmem:[%s782_s0 + $0x8] sm:$0xff]   ;;  %v563_v5 = vld [vmem:[%s782_s0 + $0x10] sm:$0xff]  }
   0x2   :  { %v618_v1 = vld [vmem:[%s783_s1] ss:$0 sm:$0xff]  ;;  %v420_v2 = vunpack.c.l.bf16 %v419_v0  ;;  %v421_v3 = vunpack.c.h.bf16 %v419_v0  ;;  %v564_v6 = vld [vmem:[%s782_s0 + $0x18] sm:$0xff]   ;;  %v424_v8 = vunpack.c.l.bf16 %v562_v4  ;;  %v425_v9 = vunpack.c.h.bf16 %v562_v4  ;;  %v566_v33 = vld [vmem:[%s782_s0 + $0x28] sm:$0xff]  }
   0x3   :  { %v632_v7 = vld [vmem:[%s784_s2] ss:$0 sm:$0xff]  ;;  %v428_v10 = vunpack.c.l.bf16 %v563_v5  ;;  %v429_v11 = vunpack.c.h.bf16 %v563_v5  ;;  %v432_v14 = vunpack.c.l.bf16 %v564_v6  ;;  %v433_v15 = vunpack.c.h.bf16 %v564_v6  ;;  %v567_v38 = vld [vmem:[%s782_s0 + $0x30] sm:$0xff]   ;;  %v568_v43 = vld [vmem:[%s782_s0 + $0x38] sm:$0xff]  }
   0x4   :  { %v85_v12 = vmul.f32 %v420_v2, %v618_v1  ;;  %v86_v13 = vmul.f32 %v421_v3, %v618_v1  ;;  %v87_v16 = vmul.f32 %v424_v8, %v618_v1  ;;  %v88_v17 = vmul.f32 %v425_v9, %v618_v1  ;;  %v565_v28 = vld [vmem:[%s782_s0 + $0x20] sm:$0xff]  }
   0x5   :  { %v89_v18 = vmul.f32 %v428_v10, %v618_v1  ;;  %v90_v19 = vmul.f32 %v429_v11, %v618_v1  ;;  %v91_v22 = vmul.f32 %v432_v14, %v618_v1  ;;  %v92_v23 = vmul.f32 %v433_v15, %v618_v1  ;;  %v569_v0 = vld [vmem:[%s782_s0 + $0x40] sm:$0xff]   ;;  %v570_v11 = vld [vmem:[%s782_s0 + $0x48] sm:$0xff]  }
   0x6   :  { %v124_v20 = vadd.f32 %v632_v7, %v85_v12  ;;  %v125_v21 = vadd.f32 %v632_v7, %v86_v13  ;;  %v126_v24 = vadd.f32 %v632_v7, %v87_v16  ;;  %v127_v25 = vadd.f32 %v632_v7, %v88_v17  ;;  %v571_v16 = vld [vmem:[%s782_s0 + $0x50] sm:$0xff]  }
   0x7   :  { %v128_v26 = vadd.f32 %v632_v7, %v89_v18  ;;  %v129_v27 = vadd.f32 %v632_v7, %v90_v19  ;;  %v130_v31 = vadd.f32 %v632_v7, %v91_v22  ;;  %v131_v32 = vadd.f32 %v632_v7, %v92_v23 }
   0x8   :  { %v156_v29 = vmax.f32 %v124_v20, 0.0  ;;  %v157_v30 = vmax.f32 %v125_v21, 0.0  ;;  %v158_v34 = vmax.f32 %v126_v24, 0.0  ;;  %v159_v35 = vmax.f32 %v127_v25, 0.0  ;;  %v572_v25 = vld [vmem:[%s782_s0 + $0x58] sm:$0xff]  }
   0x9   :  { %v160_v36 = vmax.f32 %v128_v26, 0.0  ;;  %v161_v37 = vmax.f32 %v129_v27, 0.0  ;;  %v162_v40 = vmax.f32 %v130_v31, 0.0  ;;  %v163_v41 = vmax.f32 %v131_v32, 0.0 }
   0xa   :  { %v485_v39 = vpack.c.bf16 %v157_v30, %v156_v29  ;;  %v436_v42 = vunpack.c.l.bf16 %v565_v28  ;;  %v490_v44 = vpack.c.bf16 %v159_v35, %v158_v34  ;;  %v437_v46 = vunpack.c.h.bf16 %v565_v28 }
   0xb   :  { %v495_v45 = vpack.c.bf16 %v161_v37, %v160_v36  ;;  %v440_v47 = vunpack.c.l.bf16 %v566_v33  ;;  %v500_v48 = vpack.c.bf16 %v163_v41, %v162_v40  ;;  %v441_v50 = vunpack.c.h.bf16 %v566_v33 }
   0xc   :  { %486 = vst [vmem:[%s785_s3] sm:$0xff] %v485_v39   ;;  %v93_v49 = vmul.f32 %v436_v42, %v618_v1  ;;  %v444_v51 = vunpack.c.l.bf16 %v567_v38  ;;  %577 = vst [vmem:[%s785_s3 + $0x8] sm:$0xff] %v490_v44   ;;  %v94_v52 = vmul.f32 %v437_v46, %v618_v1  ;;  %v445_v54 = vunpack.c.h.bf16 %v567_v38  ;;  %v573_v38 = vld [vmem:[%s782_s0 + $0x60] sm:$0xff]  }
   0xd   :  { %578 = vst [vmem:[%s785_s3 + $0x10] sm:$0xff] %v495_v45   ;;  %v95_v53 = vmul.f32 %v440_v47, %v618_v1  ;;  %v448_v55 = vunpack.c.l.bf16 %v568_v43  ;;  %579 = vst [vmem:[%s785_s3 + $0x18] sm:$0xff] %v500_v48   ;;  %v96_v57 = vmul.f32 %v441_v50, %v618_v1  ;;  %v449_v59 = vunpack.c.h.bf16 %v568_v43 }
   0xe   :  { %v132_v56 = vadd.f32 %v632_v7, %v93_v49  ;;  %v97_v58 = vmul.f32 %v444_v51, %v618_v1  ;;  %v133_v60 = vadd.f32 %v632_v7, %v94_v52  ;;  %v98_v62 = vmul.f32 %v445_v54, %v618_v1  ;;  %v574_v51 = vld [vmem:[%s782_s0 + $0x68] sm:$0xff]  }
   0xf   :  { %v134_v61 = vadd.f32 %v632_v7, %v95_v53  ;;  %v99_v63 = vmul.f32 %v448_v55, %v618_v1  ;;  %v135_v3 = vadd.f32 %v632_v7, %v96_v57  ;;  %v100_v5 = vmul.f32 %v449_v59, %v618_v1 }
  0x10   :  { %v164_v2 = vmax.f32 %v132_v56, 0.0  ;;  %v136_v4 = vadd.f32 %v632_v7, %v97_v58  ;;  %v165_v6 = vmax.f32 %v133_v60, 0.0  ;;  %v137_v9 = vadd.f32 %v632_v7, %v98_v62  ;;  %v575_v60 = vld [vmem:[%s782_s0 + $0x70] sm:$0xff]  }
  0x11   :  { %v166_v8 = vmax.f32 %v134_v61, 0.0  ;;  %v138_v10 = vadd.f32 %v632_v7, %v99_v63  ;;  %v167_v12 = vmax.f32 %v135_v3, 0.0  ;;  %v139_v14 = vadd.f32 %v632_v7, %v100_v5 }
  0x12   :  { %v168_v13 = vmax.f32 %v136_v4, 0.0  ;;  %v452_v15 = vunpack.c.l.bf16 %v569_v0  ;;  %v505_v17 = vpack.c.bf16 %v165_v6, %v164_v2  ;;  %v169_v18 = vmax.f32 %v137_v9, 0.0  ;;  %v576_v2 = vld [vmem:[%s782_s0 + $0x78] sm:$0xff]  }
  0x13   :  { %v170_v19 = vmax.f32 %v138_v10, 0.0  ;;  %v453_v20 = vunpack.c.h.bf16 %v569_v0  ;;  %v510_v21 = vpack.c.bf16 %v167_v12, %v166_v8  ;;  %v171_v22 = vmax.f32 %v139_v14, 0.0 }
  0x14   :  { %v101_v23 = vmul.f32 %v452_v15, %v618_v1  ;;  %v456_v24 = vunpack.c.l.bf16 %v570_v11  ;;  %580 = vst [vmem:[%s785_s3 + $0x20] sm:$0xff] %v505_v17   ;;  %v515_v26 = vpack.c.bf16 %v169_v18, %v168_v13  ;;  %v457_v28 = vunpack.c.h.bf16 %v570_v11 }
  0x15   :  { %v102_v27 = vmul.f32 %v453_v20, %v618_v1  ;;  %v460_v29 = vunpack.c.l.bf16 %v571_v16  ;;  %581 = vst [vmem:[%s785_s3 + $0x28] sm:$0xff] %v510_v21   ;;  %v520_v30 = vpack.c.bf16 %v171_v22, %v170_v19  ;;  %v461_v33 = vunpack.c.h.bf16 %v571_v16 }
  0x16   :  { %v140_v31 = vadd.f32 %v632_v7, %v101_v23  ;;  %v103_v32 = vmul.f32 %v456_v24, %v618_v1  ;;  %582 = vst [vmem:[%s785_s3 + $0x30] sm:$0xff] %v515_v26   ;;  %v104_v35 = vmul.f32 %v457_v28, %v618_v1  ;;  %v464_v37 = vunpack.c.l.bf16 %v572_v25 }
  0x17   :  { %v141_v34 = vadd.f32 %v632_v7, %v102_v27  ;;  %v105_v36 = vmul.f32 %v460_v29, %v618_v1  ;;  %583 = vst [vmem:[%s785_s3 + $0x38] sm:$0xff] %v520_v30   ;;  %v106_v41 = vmul.f32 %v461_v33, %v618_v1  ;;  %v465_v42 = vunpack.c.h.bf16 %v572_v25 }
  0x18   :  { %v172_v39 = vmax.f32 %v140_v31, 0.0  ;;  %v142_v40 = vadd.f32 %v632_v7, %v103_v32  ;;  %v143_v44 = vadd.f32 %v632_v7, %v104_v35  ;;  %v107_v46 = vmul.f32 %v464_v37, %v618_v1 }
  0x19   :  { %v173_v43 = vmax.f32 %v141_v34, 0.0  ;;  %v144_v45 = vadd.f32 %v632_v7, %v105_v36  ;;  %v145_v48 = vadd.f32 %v632_v7, %v106_v41  ;;  %v108_v49 = vmul.f32 %v465_v42, %v618_v1 }
  0x1a   :  { %v174_v47 = vmax.f32 %v142_v40, 0.0  ;;  %v468_v50 = vunpack.c.l.bf16 %v573_v38  ;;  %v175_v53 = vmax.f32 %v143_v44, 0.0  ;;  %v146_v55 = vadd.f32 %v632_v7, %v107_v46 }
  0x1b   :  { %v525_v52 = vpack.c.bf16 %v173_v43, %v172_v39  ;;  %v176_v54 = vmax.f32 %v144_v45, 0.0  ;;  %v177_v56 = vmax.f32 %v145_v48, 0.0  ;;  %v147_v57 = vadd.f32 %v632_v7, %v108_v49 }
  0x1c   :  { %v469_v58 = vunpack.c.h.bf16 %v573_v38  ;;  %v109_v59 = vmul.f32 %v468_v50, %v618_v1  ;;  %v530_v61 = vpack.c.bf16 %v175_v53, %v174_v47  ;;  %v178_v62 = vmax.f32 %v146_v55, 0.0 }
  0x1d   :  { %584 = vst [vmem:[%s785_s3 + $0x40] sm:$0xff] %v525_v52   ;;  %v472_v63 = vunpack.c.l.bf16 %v574_v51  ;;  %v473_v0 = vunpack.c.h.bf16 %v574_v51  ;;  %v535_v3 = vpack.c.bf16 %v177_v56, %v176_v54  ;;  %v179_v4 = vmax.f32 %v147_v57, 0.0 }
  0x1e   :  { %v110_v5 = vmul.f32 %v469_v58, %v618_v1  ;;  %v148_v6 = vadd.f32 %v632_v7, %v109_v59  ;;  %585 = vst [vmem:[%s785_s3 + $0x48] sm:$0xff] %v530_v61   ;;  %v476_v10 = vunpack.c.l.bf16 %v575_v60  ;;  %v477_v11 = vunpack.c.h.bf16 %v575_v60 }
  0x1f   :  { %v111_v8 = vmul.f32 %v472_v63, %v618_v1  ;;  %v112_v9 = vmul.f32 %v473_v0, %v618_v1  ;;  %586 = vst [vmem:[%s785_s3 + $0x50] sm:$0xff] %v535_v3   ;;  %v540_v12 = vpack.c.bf16 %v179_v4, %v178_v62  ;;  %v480_v15 = vunpack.c.l.bf16 %v576_v2 }
  0x20   :  { %v149_v13 = vadd.f32 %v632_v7, %v110_v5  ;;  %v180_v14 = vmax.f32 %v148_v6, 0.0  ;;  %v113_v18 = vmul.f32 %v476_v10, %v618_v1  ;;  %v114_v19 = vmul.f32 %v477_v11, %v618_v1 }
  0x21   :  { %v150_v16 = vadd.f32 %v632_v7, %v111_v8  ;;  %v151_v17 = vadd.f32 %v632_v7, %v112_v9  ;;  %587 = vst [vmem:[%s785_s3 + $0x58] sm:$0xff] %v540_v12   ;;  %v481_v21 = vunpack.c.h.bf16 %v576_v2  ;;  %v115_v22 = vmul.f32 %v480_v15, %v618_v1 }
  0x22   :  { %v181_v20 = vmax.f32 %v149_v13, 0.0  ;;  %v152_v25 = vadd.f32 %v632_v7, %v113_v18  ;;  %v153_v26 = vadd.f32 %v632_v7, %v114_v19 }
  0x23   :  { %v182_v23 = vmax.f32 %v150_v16, 0.0  ;;  %v183_v24 = vmax.f32 %v151_v17, 0.0  ;;  %v116_v28 = vmul.f32 %v481_v21, %v618_v1  ;;  %v154_v29 = vadd.f32 %v632_v7, %v115_v22 }
  0x24   :  { %v545_v27 = vpack.c.bf16 %v181_v20, %v180_v14  ;;  %v184_v31 = vmax.f32 %v152_v25, 0.0  ;;  %v185_v32 = vmax.f32 %v153_v26, 0.0 }
  0x25   :  { %v550_v30 = vpack.c.bf16 %v183_v24, %v182_v23  ;;  %v155_v33 = vadd.f32 %v632_v7, %v116_v28  ;;  %v186_v34 = vmax.f32 %v154_v29, 0.0 }
  0x26   :  { %588 = vst [vmem:[%s785_s3 + $0x60] sm:$0xff] %v545_v27   ;;  %v555_v35 = vpack.c.bf16 %v185_v32, %v184_v31 }
  0x27   :  { %589 = vst [vmem:[%s785_s3 + $0x68] sm:$0xff] %v550_v30   ;;  %v187_v36 = vmax.f32 %v155_v33, 0.0 }
  0x28   :  { %590 = vst [vmem:[%s785_s3 + $0x70] sm:$0xff] %v555_v35  }
  0x29   :  { %v560_v1 = vpack.c.bf16 %v187_v36, %v186_v34 }
  0x2b   :  { %591 = vst [vmem:[%s785_s3 + $0x78] sm:$0xff] %v560_v1  }

// kernel: basic_block_forward.4
= control target key start
LH: loop header
LB: loop body
LE: loop exit
PB: predicated region body
PF: predicated region fallthrough
CT: control target
= control target key end

     0   :  { %vm638_vm0 = vcmask 1040384   ;;  %s1909_s1 = inlined_call_operand.vmem [shape: bf16[128,128], index: 1, kind: input, shape index: {}]   ;;  %s1910_s2 = inlined_call_operand.vmem [shape: bf16[128,128], index: 2, kind: input, shape index: {}]   ;;  %s1911_s0 = inlined_call_operand.vmem [shape: bf16[256,128], index: 0, kind: input, shape index: {}]   ;;  %s1912_s3 = inlined_call_operand.vmem [shape: bf16[256,128], index: 3, kind: output, shape index: {0}]   ;;  %s1913_s5 = inlined_call_operand.vmem [shape: bf16[256,128], index: 5, kind: output, shape index: {2}]   ;;  %s1914_s4 = inlined_call_operand.vmem [shape: f32[1,2,128], index: 4, kind: output, shape index: {1}]   ;;  %s1915_s6 = inlined_call_operand.vmem [shape: f32[1,2,128], index: 6, kind: output, shape index: {3}]  }
   0x1   :  { %v1644_v0 = vld [vmem:[%s1909_s1 + $0x38] sm:$0xff]   ;;  %v1646_v2 = vld [vmem:[%s1909_s1 + $0x30] sm:$0xff]   ;;  %v1648_v4 = vld [vmem:[%s1909_s1 + $0x28] sm:$0xff]  }
   0x2   :  { %v1645_v1 = vld [vmem:[%s1910_s2 + $0x38] sm:$0xff]   ;;  %1548 = vmatprep.subr.bf16.mxu0 %v1644_v0  ;;  %v1647_v3 = vld [vmem:[%s1910_s2 + $0x30] sm:$0xff]   ;;  %v1649_v5 = vld [vmem:[%s1910_s2 + $0x28] sm:$0xff]  }
   0x3   :  { %1596 = vmatprep.subr.bf16.mxu1 %v1645_v1  ;;  %1549 = vmatpush3.bf16.msra.mxu0 %v1644_v0  ;;  %v1650_v6 = vld [vmem:[%s1909_s1 + $0x20] sm:$0xff]   ;;  %v1652_v8 = vld [vmem:[%s1909_s1 + $0x18] sm:$0xff]   ;;  %v1654_v10 = vld [vmem:[%s1909_s1 + $0x10] sm:$0xff]  }
   0x4   :  { %1597 = vmatpush3.bf16.msra.mxu1 %v1645_v1  ;;  %1550 = vmatprep.subr.bf16.mxu0 %v1646_v2  ;;  %v1651_v7 = vld [vmem:[%s1910_s2 + $0x20] sm:$0xff]   ;;  %v1653_v9 = vld [vmem:[%s1910_s2 + $0x18] sm:$0xff]   ;;  %v1655_v12 = vld [vmem:[%s1910_s2 + $0x10] sm:$0xff]  }
   0x5   :  { %1598 = vmatprep.subr.bf16.mxu1 %v1647_v3  ;;  %v1660_v11 = vld [vmem:[%s1911_s0] sm:$0xff]   ;;  %v1656_v13 = vld [vmem:[%s1909_s1 + $0x8] sm:$0xff]   ;;  %v1662_v18 = vld [vmem:[%s1911_s0 + $0x10] sm:$0xff]  }
   0x6   :  { %1564 = vmatprep.mubr.bf16.mxu0 %v1660_v11  ;;  %1612 = vmatprep.mubr.bf16.mxu1 %v1660_v11  ;;  %v1657_v14 = vld [vmem:[%s1910_s2 + $0x8] sm:$0xff]   ;;  %v1658_v15 = vld [vmem:[%s1909_s1] sm:$0xff]   ;;  %v1663_v19 = vld [vmem:[%s1911_s0 + $0x18] sm:$0xff]  }
   0x7   :  { %1551 = vmatpush3.bf16.msra.mxu0 %v1646_v2  ;;  %v1659_v16 = vld [vmem:[%s1910_s2] sm:$0xff]   ;;  %v1661_v17 = vld [vmem:[%s1911_s0 + $0x8] sm:$0xff]   ;;  %v1666_v22 = vld [vmem:[%s1911_s0 + $0x30] sm:$0xff]  }
   0x8   :  { %1599 = vmatpush3.bf16.msra.mxu1 %v1647_v3  ;;  %1552 = vmatprep.subr.bf16.mxu0 %v1648_v4  ;;  %v1664_v20 = vld [vmem:[%s1911_s0 + $0x20] sm:$0xff]   ;;  %v1665_v21 = vld [vmem:[%s1911_s0 + $0x28] sm:$0xff]   ;;  %v1667_v23 = vld [vmem:[%s1911_s0 + $0x38] sm:$0xff]  }
   0x9   :  { %1600 = vmatprep.subr.bf16.mxu1 %v1649_v5  ;;  %v1668_v24 = vld [vmem:[%s1911_s0 + $0x40] sm:$0xff]   ;;  %v1669_v25 = vld [vmem:[%s1911_s0 + $0x48] sm:$0xff]   ;;  %v1670_v26 = vld [vmem:[%s1911_s0 + $0x50] sm:$0xff]  }
   0xa   :  { %v1671_v27 = vld [vmem:[%s1911_s0 + $0x58] sm:$0xff]   ;;  %v1672_v28 = vld [vmem:[%s1911_s0 + $0x60] sm:$0xff]   ;;  %v1673_v29 = vld [vmem:[%s1911_s0 + $0x68] sm:$0xff]  }
   0xb   :  { %1553 = vmatpush3.bf16.msra.mxu0 %v1648_v4  ;;  %v1674_v30 = vld [vmem:[%s1911_s0 + $0x70] sm:$0xff]   ;;  %v1675_v31 = vld [vmem:[%s1911_s0 + $0x78] sm:$0xff]  }
   0xc   :  { %1601 = vmatpush3.bf16.msra.mxu1 %v1649_v5  ;;  %1554 = vmatprep.subr.bf16.mxu0 %v1650_v6 }
   0xd   :  { %1602 = vmatprep.subr.bf16.mxu1 %v1651_v7 }
   0xf   :  { %1555 = vmatpush3.bf16.msra.mxu0 %v1650_v6 }
  0x10   :  { %1603 = vmatpush3.bf16.msra.mxu1 %v1651_v7  ;;  %1556 = vmatprep.subr.bf16.mxu0 %v1652_v8 }
  0x11   :  { %1604 = vmatprep.subr.bf16.mxu1 %v1653_v9 }
  0x13   :  { %1557 = vmatpush3.bf16.msra.mxu0 %v1652_v8 }
  0x14   :  { %1605 = vmatpush3.bf16.msra.mxu1 %v1653_v9  ;;  %1558 = vmatprep.subr.bf16.mxu0 %v1654_v10 }
  0x15   :  { %1606 = vmatprep.subr.bf16.mxu1 %v1655_v12 }
  0x17   :  { %1559 = vmatpush3.bf16.msra.mxu0 %v1654_v10 }
  0x18   :  { %1607 = vmatpush3.bf16.msra.mxu1 %v1655_v12  ;;  %1560 = vmatprep.subr.bf16.mxu0 %v1656_v13 }
  0x19   :  { %1608 = vmatprep.subr.bf16.mxu1 %v1657_v14 }
  0x1b   :  { %1561 = vmatpush3.bf16.msra.mxu0 %v1656_v13 }
  0x1c   :  { %1609 = vmatpush3.bf16.msra.mxu1 %v1657_v14  ;;  %1562 = vmatprep.subr.bf16.mxu0 %v1658_v15 }
  0x1d   :  { %1610 = vmatprep.subr.bf16.mxu1 %v1659_v16 }
  0x1f   :  { %1563 = vmatpush3.bf16.msra.mxu0 %v1658_v15 }
  0x20   :  { %1611 = vmatpush3.bf16.msra.mxu1 %v1659_v16 }
  0x22   :  { %1565 = vmatmul.mubr.bf16.vlgmr.msra.gmra.mxu0 %v1661_v17 }
  0x23   :  { %1613 = vmatmul.mubr.bf16.vlgmr.msra.gmra.mxu1 %v1661_v17  ;;  %1568 = vmatprep.mubr.bf16.mxu0 %v1662_v18 }
  0x24   :  { %1616 = vmatprep.mubr.bf16.mxu1 %v1662_v18 }
  0x2a   :  { %1569 = vmatmul.mubr.bf16.gmra.mxu0 %v1663_v19 }
  0x2b   :  { %1617 = vmatmul.mubr.bf16.gmra.mxu1 %v1663_v19  ;;  %1572 = vmatprep.mubr.bf16.mxu0 %v1664_v20 }
  0x2c   :  { %1620 = vmatprep.mubr.bf16.mxu1 %v1664_v20 }
  0x32   :  { %1573 = vmatmul.mubr.bf16.gmra.mxu0 %v1665_v21 }
  0x33   :  { %1621 = vmatmul.mubr.bf16.gmra.mxu1 %v1665_v21  ;;  %1576 = vmatprep.mubr.bf16.mxu0 %v1666_v22 }
  0x34   :  { %1624 = vmatprep.mubr.bf16.mxu1 %v1666_v22 }
  0x3a   :  { %1577 = vmatmul.mubr.bf16.gmra.mxu0 %v1667_v23 }
  0x3b   :  { %1625 = vmatmul.mubr.bf16.gmra.mxu1 %v1667_v23  ;;  %1580 = vmatprep.mubr.bf16.mxu0 %v1668_v24 }
  0x3c   :  { %1628 = vmatprep.mubr.bf16.mxu1 %v1668_v24 }
  0x42   :  { %1581 = vmatmul.mubr.bf16.gmra.mxu0 %v1669_v25 }
  0x43   :  { %1629 = vmatmul.mubr.bf16.gmra.mxu1 %v1669_v25  ;;  %1584 = vmatprep.mubr.bf16.mxu0 %v1670_v26 }
  0x44   :  { %1632 = vmatprep.mubr.bf16.mxu1 %v1670_v26 }
  0x4a   :  { %1585 = vmatmul.mubr.bf16.gmra.mxu0 %v1671_v27 }
  0x4b   :  { %1633 = vmatmul.mubr.bf16.gmra.mxu1 %v1671_v27  ;;  %1588 = vmatprep.mubr.bf16.mxu0 %v1672_v28 }
  0x4c   :  { %1636 = vmatprep.mubr.bf16.mxu1 %v1672_v28 }
  0x52   :  { %1589 = vmatmul.mubr.bf16.gmra.mxu0 %v1673_v29 }
  0x53   :  { %1637 = vmatmul.mubr.bf16.gmra.mxu1 %v1673_v29  ;;  %1592 = vmatprep.mubr.bf16.mxu0 %v1674_v30 }
  0x54   :  { %1640 = vmatprep.mubr.bf16.mxu1 %v1674_v30 }
  0x5a   :  { %1593 = vmatmul.mubr.bf16.gmra.mxu0 %v1675_v31 }
  0x5b   :  { %1641 = vmatmul.mubr.bf16.gmra.mxu1 %v1675_v31 }
  0xe2   :  { %v1566_v32 = vpop.f32.mrf.mxu0 }
  0xe3   :  { %v1614_v33 = vpop.f32.mrf.mxu1  ;;  %v571_v51 = vmul.f32 %v1566_v32, %v1566_v32 }
  0xe4   :  { %v245_v34 = vpop.f32.mrf.mxu0  ;;  %v1065_v55 = vmul.f32 %v1614_v33, %v1614_v33 }
  0xe5   :  { %v739_v35 = vpop.f32.mrf.mxu1  ;;  %v569_v41 = vmul.f32 %v245_v34, %v245_v34 }
  0xe6   :  { %v1567_v36 = vpop.f32.mrf.mxu0  ;;  %v1063_v46 = vmul.f32 %v739_v35, %v739_v35 }
  0xe7   :  { %v1318_v37 = vpack.c.bf16 %v1567_v36, %v1566_v32  ;;  %v1615_v38 = vpop.f32.mrf.mxu1  ;;  %v572_v59 = vmul.f32 %v1567_v36, %v1567_v36 }
  0xe8   :  { %v1398_v39 = vpack.c.bf16 %v1615_v38, %v1614_v33  ;;  %v248_v40 = vpop.f32.mrf.mxu0  ;;  %v1066_v63 = vmul.f32 %v1615_v38, %v1615_v38 }
  0xe9   :  { %1470 = vst [vmem:[%s1912_s3 + $0x8] sm:$0xff] %v1318_v37   ;;  %v1313_v42 = vpack.c.bf16 %v248_v40, %v245_v34  ;;  %v532_v43 = vadd.f32 %v248_v40, %v245_v34  ;;  %v570_v44 = vmul.f32 %v248_v40, %v248_v40  ;;  %v742_v45 = vpop.f32.mrf.mxu1 }
  0xea   :  { %1485 = vst [vmem:[%s1913_s5 + $0x8] sm:$0xff] %v1398_v39   ;;  %v1393_v47 = vpack.c.bf16 %v742_v45, %v739_v35  ;;  %v1026_v48 = vadd.f32 %v742_v45, %v739_v35  ;;  %v1064_v49 = vmul.f32 %v742_v45, %v742_v45  ;;  %v1570_v50 = vpop.f32.mrf.mxu0 }
  0xeb   :  { %1314 = vst [vmem:[%s1912_s3] sm:$0xff] %v1313_v42   ;;  %v533_v52 = vadd.f32 %v1566_v32, %v532_v43  ;;  %v601_v53 = vadd.f32 %v570_v44, %v569_v41  ;;  %v1618_v54 = vpop.f32.mrf.mxu1  ;;  %v575_v23 = vmul.f32 %v1570_v50, %v1570_v50 }
  0xec   :  { %1394 = vst [vmem:[%s1913_s5] sm:$0xff] %v1393_v47   ;;  %v1027_v56 = vadd.f32 %v1614_v33, %v1026_v48  ;;  %v1095_v57 = vadd.f32 %v1064_v49, %v1063_v46  ;;  %v261_v58 = vpop.f32.mrf.mxu0  ;;  %v1069_v27 = vmul.f32 %v1618_v54, %v1618_v54 }
  0xed   :  { %v602_v60 = vadd.f32 %v601_v53, %v571_v51  ;;  %v534_v61 = vadd.f32 %v1567_v36, %v533_v52  ;;  %v755_v62 = vpop.f32.mrf.mxu1  ;;  %v573_v4 = vmul.f32 %v261_v58, %v261_v58 }
  0xee   :  { %v1096_v0 = vadd.f32 %v1095_v57, %v1065_v55  ;;  %v1028_v1 = vadd.f32 %v1615_v38, %v1027_v56  ;;  %v1571_v2 = vpop.f32.mrf.mxu0  ;;  %v1067_v9 = vmul.f32 %v755_v62, %v755_v62 }
  0xef   :  { %v535_v3 = vadd.f32 %v534_v61, %v261_v58  ;;  %v603_v5 = vadd.f32 %v602_v60, %v572_v59  ;;  %v1328_v6 = vpack.c.bf16 %v1571_v2, %v1570_v50  ;;  %v1619_v7 = vpop.f32.mrf.mxu1  ;;  %v576_v31 = vmul.f32 %v1571_v2, %v1571_v2 }
  0xf0   :  { %v1029_v8 = vadd.f32 %v1028_v1, %v755_v62  ;;  %v1097_v10 = vadd.f32 %v1096_v0, %v1066_v63  ;;  %v1408_v11 = vpack.c.bf16 %v1619_v7, %v1618_v54  ;;  %v264_v12 = vpop.f32.mrf.mxu0  ;;  %v1070_v35 = vmul.f32 %v1619_v7, %v1619_v7 }
  0xf1   :  { %v604_v13 = vadd.f32 %v603_v5, %v573_v4  ;;  %1472 = vst [vmem:[%s1912_s3 + $0x18] sm:$0xff] %v1328_v6   ;;  %v1323_v14 = vpack.c.bf16 %v264_v12, %v261_v58  ;;  %v536_v15 = vadd.f32 %v535_v3, %v264_v12  ;;  %v574_v16 = vmul.f32 %v264_v12, %v264_v12  ;;  %v758_v17 = vpop.f32.mrf.mxu1 }
  0xf2   :  { %v1098_v18 = vadd.f32 %v1097_v10, %v1067_v9  ;;  %1487 = vst [vmem:[%s1913_s5 + $0x18] sm:$0xff] %v1408_v11   ;;  %v1403_v19 = vpack.c.bf16 %v758_v17, %v755_v62  ;;  %v1030_v20 = vadd.f32 %v1029_v8, %v758_v17  ;;  %v1068_v21 = vmul.f32 %v758_v17, %v758_v17  ;;  %v1574_v22 = vpop.f32.mrf.mxu0 }
  0xf3   :  { %1471 = vst [vmem:[%s1912_s3 + $0x10] sm:$0xff] %v1323_v14   ;;  %v537_v24 = vadd.f32 %v1570_v50, %v536_v15  ;;  %v605_v25 = vadd.f32 %v604_v13, %v574_v16  ;;  %v1622_v26 = vpop.f32.mrf.mxu1  ;;  %v579_v59 = vmul.f32 %v1574_v22, %v1574_v22 }
  0xf4   :  { %1486 = vst [vmem:[%s1913_s5 + $0x10] sm:$0xff] %v1403_v19   ;;  %v1031_v28 = vadd.f32 %v1618_v54, %v1030_v20  ;;  %v1099_v29 = vadd.f32 %v1098_v18, %v1068_v21  ;;  %v277_v30 = vpop.f32.mrf.mxu0  ;;  %v1073_v63 = vmul.f32 %v1622_v26, %v1622_v26 }
  0xf5   :  { %v606_v32 = vadd.f32 %v605_v25, %v575_v23  ;;  %v538_v33 = vadd.f32 %v1571_v2, %v537_v24  ;;  %v771_v34 = vpop.f32.mrf.mxu1  ;;  %v577_v40 = vmul.f32 %v277_v30, %v277_v30 }
  0xf6   :  { %v1100_v36 = vadd.f32 %v1099_v29, %v1069_v27  ;;  %v1032_v37 = vadd.f32 %v1619_v7, %v1031_v28  ;;  %v1575_v38 = vpop.f32.mrf.mxu0  ;;  %v1071_v45 = vmul.f32 %v771_v34, %v771_v34 }
  0xf7   :  { %v539_v39 = vadd.f32 %v538_v33, %v277_v30  ;;  %v607_v41 = vadd.f32 %v606_v32, %v576_v31  ;;  %v1338_v42 = vpack.c.bf16 %v1575_v38, %v1574_v22  ;;  %v1623_v43 = vpop.f32.mrf.mxu1  ;;  %v580_v3 = vmul.f32 %v1575_v38, %v1575_v38 }
  0xf8   :  { %v1033_v44 = vadd.f32 %v1032_v37, %v771_v34  ;;  %v1101_v46 = vadd.f32 %v1100_v36, %v1070_v35  ;;  %v1418_v47 = vpack.c.bf16 %v1623_v43, %v1622_v26  ;;  %v280_v48 = vpop.f32.mrf.mxu0  ;;  %v1074_v7 = vmul.f32 %v1623_v43, %v1623_v43 }
  0xf9   :  { %v608_v49 = vadd.f32 %v607_v41, %v577_v40  ;;  %1474 = vst [vmem:[%s1912_s3 + $0x28] sm:$0xff] %v1338_v42   ;;  %v1333_v50 = vpack.c.bf16 %v280_v48, %v277_v30  ;;  %v540_v51 = vadd.f32 %v539_v39, %v280_v48  ;;  %v578_v52 = vmul.f32 %v280_v48, %v280_v48  ;;  %v774_v53 = vpop.f32.mrf.mxu1 }
  0xfa   :  { %v1102_v54 = vadd.f32 %v1101_v46, %v1071_v45  ;;  %1489 = vst [vmem:[%s1913_s5 + $0x28] sm:$0xff] %v1418_v47   ;;  %v1413_v55 = vpack.c.bf16 %v774_v53, %v771_v34  ;;  %v1034_v56 = vadd.f32 %v1033_v44, %v774_v53  ;;  %v1072_v57 = vmul.f32 %v774_v53, %v774_v53  ;;  %v1578_v58 = vpop.f32.mrf.mxu0 }
  0xfb   :  { %1473 = vst [vmem:[%s1912_s3 + $0x20] sm:$0xff] %v1333_v50   ;;  %v541_v60 = vadd.f32 %v1574_v22, %v540_v51  ;;  %v609_v61 = vadd.f32 %v608_v49, %v578_v52  ;;  %v1626_v62 = vpop.f32.mrf.mxu1  ;;  %v583_v31 = vmul.f32 %v1578_v58, %v1578_v58 }
  0xfc   :  { %1488 = vst [vmem:[%s1913_s5 + $0x20] sm:$0xff] %v1413_v55   ;;  %v1035_v0 = vadd.f32 %v1622_v26, %v1034_v56  ;;  %v1103_v1 = vadd.f32 %v1102_v54, %v1072_v57  ;;  %v293_v2 = vpop.f32.mrf.mxu0  ;;  %v1077_v35 = vmul.f32 %v1626_v62, %v1626_v62 }
  0xfd   :  { %v610_v4 = vadd.f32 %v609_v61, %v579_v59  ;;  %v542_v5 = vadd.f32 %v1575_v38, %v541_v60  ;;  %v787_v6 = vpop.f32.mrf.mxu1  ;;  %v581_v12 = vmul.f32 %v293_v2, %v293_v2 }
  0xfe   :  { %v1104_v8 = vadd.f32 %v1103_v1, %v1073_v63  ;;  %v1036_v9 = vadd.f32 %v1623_v43, %v1035_v0  ;;  %v1579_v10 = vpop.f32.mrf.mxu0  ;;  %v1075_v17 = vmul.f32 %v787_v6, %v787_v6 }
  0xff   :  { %v543_v11 = vadd.f32 %v542_v5, %v293_v2  ;;  %v611_v13 = vadd.f32 %v610_v4, %v580_v3  ;;  %v1348_v14 = vpack.c.bf16 %v1579_v10, %v1578_v58  ;;  %v1627_v15 = vpop.f32.mrf.mxu1  ;;  %v584_v39 = vmul.f32 %v1579_v10, %v1579_v10 }
 0x100   :  { %v1037_v16 = vadd.f32 %v1036_v9, %v787_v6  ;;  %v1105_v18 = vadd.f32 %v1104_v8, %v1074_v7  ;;  %v1428_v19 = vpack.c.bf16 %v1627_v15, %v1626_v62  ;;  %v296_v20 = vpop.f32.mrf.mxu0  ;;  %v1078_v43 = vmul.f32 %v1627_v15, %v1627_v15 }
 0x101   :  { %v612_v21 = vadd.f32 %v611_v13, %v581_v12  ;;  %1476 = vst [vmem:[%s1912_s3 + $0x38] sm:$0xff] %v1348_v14   ;;  %v1343_v22 = vpack.c.bf16 %v296_v20, %v293_v2  ;;  %v544_v23 = vadd.f32 %v543_v11, %v296_v20  ;;  %v582_v24 = vmul.f32 %v296_v20, %v296_v20  ;;  %v790_v25 = vpop.f32.mrf.mxu1 }
 0x102   :  { %v1106_v26 = vadd.f32 %v1105_v18, %v1075_v17  ;;  %1491 = vst [vmem:[%s1913_s5 + $0x38] sm:$0xff] %v1428_v19   ;;  %v1423_v27 = vpack.c.bf16 %v790_v25, %v787_v6  ;;  %v1038_v28 = vadd.f32 %v1037_v16, %v790_v25  ;;  %v1076_v29 = vmul.f32 %v790_v25, %v790_v25  ;;  %v1582_v30 = vpop.f32.mrf.mxu0 }
 0x103   :  { %1475 = vst [vmem:[%s1912_s3 + $0x30] sm:$0xff] %v1343_v22   ;;  %v545_v32 = vadd.f32 %v1578_v58, %v544_v23  ;;  %v613_v33 = vadd.f32 %v612_v21, %v582_v24  ;;  %v1630_v34 = vpop.f32.mrf.mxu1  ;;  %v587_v3 = vmul.f32 %v1582_v30, %v1582_v30 }
 0x104   :  { %1490 = vst [vmem:[%s1913_s5 + $0x30] sm:$0xff] %v1423_v27   ;;  %v1039_v36 = vadd.f32 %v1626_v62, %v1038_v28  ;;  %v1107_v37 = vadd.f32 %v1106_v26, %v1076_v29  ;;  %v309_v38 = vpop.f32.mrf.mxu0  ;;  %v1081_v7 = vmul.f32 %v1630_v34, %v1630_v34 }
 0x105   :  { %v614_v40 = vadd.f32 %v613_v33, %v583_v31  ;;  %v546_v41 = vadd.f32 %v1579_v10, %v545_v32  ;;  %v803_v42 = vpop.f32.mrf.mxu1  ;;  %v585_v48 = vmul.f32 %v309_v38, %v309_v38 }
 0x106   :  { %v1108_v44 = vadd.f32 %v1107_v37, %v1077_v35  ;;  %v1040_v45 = vadd.f32 %v1627_v15, %v1039_v36  ;;  %v1583_v46 = vpop.f32.mrf.mxu0  ;;  %v1079_v53 = vmul.f32 %v803_v42, %v803_v42 }
 0x107   :  { %v547_v47 = vadd.f32 %v546_v41, %v309_v38  ;;  %v615_v49 = vadd.f32 %v614_v40, %v584_v39  ;;  %v1358_v50 = vpack.c.bf16 %v1583_v46, %v1582_v30  ;;  %v1631_v51 = vpop.f32.mrf.mxu1  ;;  %v588_v11 = vmul.f32 %v1583_v46, %v1583_v46 }
 0x108   :  { %v1041_v52 = vadd.f32 %v1040_v45, %v803_v42  ;;  %v1109_v54 = vadd.f32 %v1108_v44, %v1078_v43  ;;  %v1438_v55 = vpack.c.bf16 %v1631_v51, %v1630_v34  ;;  %v312_v56 = vpop.f32.mrf.mxu0  ;;  %v1082_v15 = vmul.f32 %v1631_v51, %v1631_v51 }
 0x109   :  { %v616_v57 = vadd.f32 %v615_v49, %v585_v48  ;;  %1478 = vst [vmem:[%s1912_s3 + $0x48] sm:$0xff] %v1358_v50   ;;  %v1353_v58 = vpack.c.bf16 %v312_v56, %v309_v38  ;;  %v548_v59 = vadd.f32 %v547_v47, %v312_v56  ;;  %v586_v60 = vmul.f32 %v312_v56, %v312_v56  ;;  %v806_v61 = vpop.f32.mrf.mxu1 }
 0x10a   :  { %v1110_v62 = vadd.f32 %v1109_v54, %v1079_v53  ;;  %1493 = vst [vmem:[%s1913_s5 + $0x48] sm:$0xff] %v1438_v55   ;;  %v1433_v63 = vpack.c.bf16 %v806_v61, %v803_v42  ;;  %v1042_v0 = vadd.f32 %v1041_v52, %v806_v61  ;;  %v1080_v1 = vmul.f32 %v806_v61, %v806_v61  ;;  %v1586_v2 = vpop.f32.mrf.mxu0 }
 0x10b   :  { %1477 = vst [vmem:[%s1912_s3 + $0x40] sm:$0xff] %v1353_v58   ;;  %v549_v4 = vadd.f32 %v1582_v30, %v548_v59  ;;  %v617_v5 = vadd.f32 %v616_v57, %v586_v60  ;;  %v1634_v6 = vpop.f32.mrf.mxu1  ;;  %v591_v39 = vmul.f32 %v1586_v2, %v1586_v2 }
 0x10c   :  { %1492 = vst [vmem:[%s1913_s5 + $0x40] sm:$0xff] %v1433_v63   ;;  %v1043_v8 = vadd.f32 %v1630_v34, %v1042_v0  ;;  %v1111_v9 = vadd.f32 %v1110_v62, %v1080_v1  ;;  %v325_v10 = vpop.f32.mrf.mxu0  ;;  %v1085_v43 = vmul.f32 %v1634_v6, %v1634_v6 }
 0x10d   :  { %v618_v12 = vadd.f32 %v617_v5, %v587_v3  ;;  %v550_v13 = vadd.f32 %v1583_v46, %v549_v4  ;;  %v819_v14 = vpop.f32.mrf.mxu1  ;;  %v589_v20 = vmul.f32 %v325_v10, %v325_v10 }
 0x10e   :  { %v1112_v16 = vadd.f32 %v1111_v9, %v1081_v7  ;;  %v1044_v17 = vadd.f32 %v1631_v51, %v1043_v8  ;;  %v1587_v18 = vpop.f32.mrf.mxu0  ;;  %v1083_v25 = vmul.f32 %v819_v14, %v819_v14 }
 0x10f   :  { %v551_v19 = vadd.f32 %v550_v13, %v325_v10  ;;  %v619_v21 = vadd.f32 %v618_v12, %v588_v11  ;;  %v1368_v22 = vpack.c.bf16 %v1587_v18, %v1586_v2  ;;  %v1635_v23 = vpop.f32.mrf.mxu1  ;;  %v592_v47 = vmul.f32 %v1587_v18, %v1587_v18 }
 0x110   :  { %v1045_v24 = vadd.f32 %v1044_v17, %v819_v14  ;;  %v1113_v26 = vadd.f32 %v1112_v16, %v1082_v15  ;;  %v1448_v27 = vpack.c.bf16 %v1635_v23, %v1634_v6  ;;  %v328_v28 = vpop.f32.mrf.mxu0  ;;  %v1086_v51 = vmul.f32 %v1635_v23, %v1635_v23 }
 0x111   :  { %v620_v29 = vadd.f32 %v619_v21, %v589_v20  ;;  %1480 = vst [vmem:[%s1912_s3 + $0x58] sm:$0xff] %v1368_v22   ;;  %v1363_v30 = vpack.c.bf16 %v328_v28, %v325_v10  ;;  %v552_v31 = vadd.f32 %v551_v19, %v328_v28  ;;  %v590_v32 = vmul.f32 %v328_v28, %v328_v28  ;;  %v822_v33 = vpop.f32.mrf.mxu1 }
 0x112   :  { %v1114_v34 = vadd.f32 %v1113_v26, %v1083_v25  ;;  %1495 = vst [vmem:[%s1913_s5 + $0x58] sm:$0xff] %v1448_v27   ;;  %v1443_v35 = vpack.c.bf16 %v822_v33, %v819_v14  ;;  %v1046_v36 = vadd.f32 %v1045_v24, %v822_v33  ;;  %v1084_v37 = vmul.f32 %v822_v33, %v822_v33  ;;  %v1590_v38 = vpop.f32.mrf.mxu0 }
 0x113   :  { %1479 = vst [vmem:[%s1912_s3 + $0x50] sm:$0xff] %v1363_v30   ;;  %v553_v40 = vadd.f32 %v1586_v2, %v552_v31  ;;  %v621_v41 = vadd.f32 %v620_v29, %v590_v32  ;;  %v1638_v42 = vpop.f32.mrf.mxu1  ;;  %v595_v11 = vmul.f32 %v1590_v38, %v1590_v38 }
 0x114   :  { %1494 = vst [vmem:[%s1913_s5 + $0x50] sm:$0xff] %v1443_v35   ;;  %v1047_v44 = vadd.f32 %v1634_v6, %v1046_v36  ;;  %v1115_v45 = vadd.f32 %v1114_v34, %v1084_v37  ;;  %v341_v46 = vpop.f32.mrf.mxu0  ;;  %v1089_v15 = vmul.f32 %v1638_v42, %v1638_v42 }
 0x115   :  { %v622_v48 = vadd.f32 %v621_v41, %v591_v39  ;;  %v554_v49 = vadd.f32 %v1587_v18, %v553_v40  ;;  %v835_v50 = vpop.f32.mrf.mxu1  ;;  %v593_v56 = vmul.f32 %v341_v46, %v341_v46 }
 0x116   :  { %v1116_v52 = vadd.f32 %v1115_v45, %v1085_v43  ;;  %v1048_v53 = vadd.f32 %v1635_v23, %v1047_v44  ;;  %v1591_v54 = vpop.f32.mrf.mxu0  ;;  %v1087_v61 = vmul.f32 %v835_v50, %v835_v50 }
 0x117   :  { %v555_v55 = vadd.f32 %v554_v49, %v341_v46  ;;  %v623_v57 = vadd.f32 %v622_v48, %v592_v47  ;;  %v1378_v58 = vpack.c.bf16 %v1591_v54, %v1590_v38  ;;  %v1639_v59 = vpop.f32.mrf.mxu1  ;;  %v596_v19 = vmul.f32 %v1591_v54, %v1591_v54 }
 0x118   :  { %v1049_v60 = vadd.f32 %v1048_v53, %v835_v50  ;;  %v1117_v62 = vadd.f32 %v1116_v52, %v1086_v51  ;;  %v1458_v63 = vpack.c.bf16 %v1639_v59, %v1638_v42  ;;  %v344_v0 = vpop.f32.mrf.mxu0  ;;  %v1090_v23 = vmul.f32 %v1639_v59, %v1639_v59 }
 0x119   :  { %v624_v1 = vadd.f32 %v623_v57, %v593_v56  ;;  %1482 = vst [vmem:[%s1912_s3 + $0x68] sm:$0xff] %v1378_v58   ;;  %v1373_v2 = vpack.c.bf16 %v344_v0, %v341_v46  ;;  %v556_v3 = vadd.f32 %v555_v55, %v344_v0  ;;  %v594_v4 = vmul.f32 %v344_v0, %v344_v0  ;;  %v838_v5 = vpop.f32.mrf.mxu1 }
 0x11a   :  { %v1118_v6 = vadd.f32 %v1117_v62, %v1087_v61  ;;  %1497 = vst [vmem:[%s1913_s5 + $0x68] sm:$0xff] %v1458_v63   ;;  %v1453_v7 = vpack.c.bf16 %v838_v5, %v835_v50  ;;  %v1050_v8 = vadd.f32 %v1049_v60, %v838_v5  ;;  %v1088_v9 = vmul.f32 %v838_v5, %v838_v5  ;;  %v1594_v10 = vpop.f32.mrf.mxu0 }
 0x11b   :  { %1481 = vst [vmem:[%s1912_s3 + $0x60] sm:$0xff] %v1373_v2   ;;  %v557_v12 = vadd.f32 %v1590_v38, %v556_v3  ;;  %v625_v13 = vadd.f32 %v624_v1, %v594_v4  ;;  %v1642_v14 = vpop.f32.mrf.mxu1  ;;  %v599_v46 = vmul.f32 %v1594_v10, %v1594_v10 }
 0x11c   :  { %1496 = vst [vmem:[%s1913_s5 + $0x60] sm:$0xff] %v1453_v7   ;;  %v1051_v16 = vadd.f32 %v1638_v42, %v1050_v8  ;;  %v1119_v17 = vadd.f32 %v1118_v6, %v1088_v9  ;;  %v357_v18 = vpop.f32.mrf.mxu0  ;;  %v1093_v49 = vmul.f32 %v1642_v14, %v1642_v14 }
 0x11d   :  { %v626_v20 = vadd.f32 %v625_v13, %v595_v11  ;;  %v558_v21 = vadd.f32 %v1591_v54, %v557_v12  ;;  %v851_v22 = vpop.f32.mrf.mxu1  ;;  %v597_v28 = vmul.f32 %v357_v18, %v357_v18 }
 0x11e   :  { %v1120_v24 = vadd.f32 %v1119_v17, %v1089_v15  ;;  %v1052_v25 = vadd.f32 %v1639_v59, %v1051_v16  ;;  %v1595_v26 = vpop.f32.mrf.mxu0  ;;  %v1091_v33 = vmul.f32 %v851_v22, %v851_v22 }
 0x11f   :  { %v559_v27 = vadd.f32 %v558_v21, %v357_v18  ;;  %v627_v29 = vadd.f32 %v626_v20, %v596_v19  ;;  %v1388_v30 = vpack.c.bf16 %v1595_v26, %v1594_v10  ;;  %v1643_v31 = vpop.f32.mrf.mxu1  ;;  %v600_v52 = vmul.f32 %v1595_v26, %v1595_v26 }
 0x120   :  { %v1053_v32 = vadd.f32 %v1052_v25, %v851_v22  ;;  %v1121_v34 = vadd.f32 %v1120_v24, %v1090_v23  ;;  %v1468_v35 = vpack.c.bf16 %v1643_v31, %v1642_v14  ;;  %v360_v36 = vpop.f32.mrf.mxu0  ;;  %v1094_v55 = vmul.f32 %v1643_v31, %v1643_v31 }
 0x121   :  { %v628_v37 = vadd.f32 %v627_v29, %v597_v28  ;;  %1484 = vst [vmem:[%s1912_s3 + $0x78] sm:$0xff] %v1388_v30   ;;  %v1383_v38 = vpack.c.bf16 %v360_v36, %v357_v18  ;;  %v560_v39 = vadd.f32 %v559_v27, %v360_v36  ;;  %v598_v40 = vmul.f32 %v360_v36, %v360_v36  ;;  %v854_v41 = vpop.f32.mrf.mxu1 }
 0x122   :  { %v1122_v42 = vadd.f32 %v1121_v34, %v1091_v33  ;;  %1499 = vst [vmem:[%s1913_s5 + $0x78] sm:$0xff] %v1468_v35   ;;  %v1463_v43 = vpack.c.bf16 %v854_v41, %v851_v22  ;;  %v1054_v44 = vadd.f32 %v1053_v32, %v854_v41  ;;  %v1092_v45 = vmul.f32 %v854_v41, %v854_v41 }
 0x123   :  { %1483 = vst [vmem:[%s1912_s3 + $0x70] sm:$0xff] %v1383_v38   ;;  %v561_v47 = vadd.f32 %v1594_v10, %v560_v39  ;;  %v629_v48 = vadd.f32 %v628_v37, %v598_v40 }
 0x124   :  { %1498 = vst [vmem:[%s1913_s5 + $0x70] sm:$0xff] %v1463_v43   ;;  %v1055_v50 = vadd.f32 %v1642_v14, %v1054_v44  ;;  %v1123_v51 = vadd.f32 %v1122_v42, %v1092_v45 }
 0x125   :  { %v562_v53 = vadd.f32 %v1595_v26, %v561_v47  ;;  %v630_v54 = vadd.f32 %v629_v48, %v599_v46 }
 0x126   :  { %v1056_v56 = vadd.f32 %v1643_v31, %v1055_v50  ;;  %v1124_v57 = vadd.f32 %v1123_v51, %v1093_v49 }
 0x127   :  { %v563_v58 = vrot.slane %v562_v53, 4  ;;  %v631_v59 = vadd.f32 %v630_v54, %v600_v52 }
 0x128   :  { %v1057_v60 = vrot.slane %v1056_v56, 4  ;;  %v1125_v61 = vadd.f32 %v1124_v57, %v1094_v55 }
 0x129   :  { %v564_v62 = vadd.f32 %v563_v58, %v562_v53  ;;  %v632_v63 = vrot.slane %v631_v59, 4 }
 0x12a   :  { %v1058_v0 = vadd.f32 %v1057_v60, %v1056_v56  ;;  %v1126_v1 = vrot.slane %v1125_v61, 4 }
 0x12b   :  { %v565_v2 = vrot.slane %v564_v62, 2  ;;  %v633_v3 = vadd.f32 %v632_v63, %v631_v59 }
 0x12c   :  { %v1059_v4 = vrot.slane %v1058_v0, 2  ;;  %v1127_v5 = vadd.f32 %v1126_v1, %v1125_v61 }
 0x12d   :  { %v566_v6 = vadd.f32 %v565_v2, %v564_v62  ;;  %v634_v7 = vrot.slane %v633_v3, 2 }
 0x12e   :  { %v1060_v8 = vadd.f32 %v1059_v4, %v1058_v0  ;;  %v1128_v9 = vrot.slane %v1127_v5, 2 }
 0x12f   :  { %v567_v10 = vrot.slane %v566_v6, 1  ;;  %v635_v11 = vadd.f32 %v634_v7, %v633_v3 }
 0x130   :  { %v1061_v12 = vrot.slane %v1060_v8, 1  ;;  %v1129_v13 = vadd.f32 %v1128_v9, %v1127_v5 }
 0x131   :  { %v636_v14 = vrot.slane %v635_v11, 1  ;;  %v568_v16 = vadd.f32 %v567_v10, %v566_v6 }
 0x132   :  { %v1130_v15 = vrot.slane %v1129_v13, 1  ;;  %v1062_v18 = vadd.f32 %v1061_v12, %v1060_v8 }
 0x133   :  { %v637_v17 = vadd.f32 %v636_v14, %v635_v11 }
 0x134   :  { %v1131_v19 = vadd.f32 %v1130_v15, %v1129_v13 }
 0x135   :  { %v639_v20 = vsel %vm638_vm0, %v568_v16, %v637_v17 }
 0x136   :  { %640 = vst [vmem:[%s1914_s4] sm:$0x3] %v639_v20  ;;  %v1132_v21 = vsel %vm638_vm0, %v1062_v18, %v1131_v19 }
 0x137   :  { %1133 = vst [vmem:[%s1915_s6] sm:$0x3] %v1132_v21 }

// kernel: basic_block_forward.6
= control target key start
LH: loop header
LB: loop body
LE: loop exit
PB: predicated region body
PF: predicated region fallthrough
CT: control target
= control target key end

     0   :  { %vm633_vm0 = vcmask 1040384   ;;  %s1172_s1 = inlined_call_operand.vmem [shape: bf16[128,128], index: 1, kind: input, shape index: {}]   ;;  %s1173_s0 = inlined_call_operand.vmem [shape: bf16[256,128], index: 0, kind: input, shape index: {}]   ;;  %s1174_s2 = inlined_call_operand.vmem [shape: bf16[256,128], index: 2, kind: output, shape index: {0}]   ;;  %s1175_s3 = inlined_call_operand.vmem [shape: f32[1,2,128], index: 3, kind: output, shape index: {1}]  }
   0x1   :  { %v915_v0 = vld [vmem:[%s1172_s1 + $0x38] sm:$0xff]   ;;  %v916_v1 = vld [vmem:[%s1172_s1 + $0x30] sm:$0xff]   ;;  %v917_v2 = vld [vmem:[%s1172_s1 + $0x28] sm:$0xff]  }
   0x2   :  { %851 = vmatprep.subr.bf16.mxu0 %v915_v0  ;;  %899 = vmatprep.subr.bf16.mxu1 %v915_v0  ;;  %v918_v3 = vld [vmem:[%s1172_s1 + $0x20] sm:$0xff]   ;;  %v919_v5 = vld [vmem:[%s1172_s1 + $0x18] sm:$0xff]   ;;  %v920_v6 = vld [vmem:[%s1172_s1 + $0x10] sm:$0xff]  }
   0x3   :  { %852 = vmatpush3.bf16.msra.mxu0 %v915_v0  ;;  %907 = vmatpush3.bf16.msra.mxu1 %v915_v0  ;;  %v923_v4 = vld [vmem:[%s1173_s0] sm:$0xff]   ;;  %v921_v8 = vld [vmem:[%s1172_s1 + $0x8] sm:$0xff]   ;;  %v925_v12 = vld [vmem:[%s1173_s0 + $0x10] sm:$0xff]  }
   0x4   :  { %853 = vmatprep.subr.bf16.mxu0 %v916_v1  ;;  %900 = vmatprep.subr.bf16.mxu1 %v916_v1  ;;  %v931_v7 = vld [vmem:[%s1173_s0 + $0x40] sm:$0xff]   ;;  %v924_v10 = vld [vmem:[%s1173_s0 + $0x8] sm:$0xff]   ;;  %v933_v13 = vld [vmem:[%s1173_s0 + $0x50] sm:$0xff]  }
   0x5   :  { %867 = vmatprep.mubr.bf16.mxu0 %v923_v4  ;;  %883 = vmatprep.mubr.bf16.mxu1 %v931_v7  ;;  %v922_v9 = vld [vmem:[%s1172_s1] sm:$0xff]   ;;  %v932_v11 = vld [vmem:[%s1173_s0 + $0x48] sm:$0xff]   ;;  %v926_v14 = vld [vmem:[%s1173_s0 + $0x18] sm:$0xff]  }
   0x6   :  { %v934_v15 = vld [vmem:[%s1173_s0 + $0x58] sm:$0xff]   ;;  %v927_v16 = vld [vmem:[%s1173_s0 + $0x20] sm:$0xff]   ;;  %v928_v18 = vld [vmem:[%s1173_s0 + $0x28] sm:$0xff]  }
   0x7   :  { %854 = vmatpush3.bf16.msra.mxu0 %v916_v1  ;;  %908 = vmatpush3.bf16.msra.mxu1 %v916_v1  ;;  %v935_v17 = vld [vmem:[%s1173_s0 + $0x60] sm:$0xff]   ;;  %v936_v19 = vld [vmem:[%s1173_s0 + $0x68] sm:$0xff]   ;;  %v929_v20 = vld [vmem:[%s1173_s0 + $0x30] sm:$0xff]  }
   0x8   :  { %855 = vmatprep.subr.bf16.mxu0 %v917_v2  ;;  %901 = vmatprep.subr.bf16.mxu1 %v917_v2  ;;  %v937_v21 = vld [vmem:[%s1173_s0 + $0x70] sm:$0xff]   ;;  %v930_v22 = vld [vmem:[%s1173_s0 + $0x38] sm:$0xff]  }
   0x9   :  { %v938_v23 = vld [vmem:[%s1173_s0 + $0x78] sm:$0xff]  }
   0xb   :  { %856 = vmatpush3.bf16.msra.mxu0 %v917_v2  ;;  %909 = vmatpush3.bf16.msra.mxu1 %v917_v2 }
   0xc   :  { %857 = vmatprep.subr.bf16.mxu0 %v918_v3  ;;  %902 = vmatprep.subr.bf16.mxu1 %v918_v3 }
   0xf   :  { %858 = vmatpush3.bf16.msra.mxu0 %v918_v3  ;;  %910 = vmatpush3.bf16.msra.mxu1 %v918_v3 }
  0x10   :  { %859 = vmatprep.subr.bf16.mxu0 %v919_v5  ;;  %903 = vmatprep.subr.bf16.mxu1 %v919_v5 }
  0x13   :  { %860 = vmatpush3.bf16.msra.mxu0 %v919_v5  ;;  %911 = vmatpush3.bf16.msra.mxu1 %v919_v5 }
  0x14   :  { %861 = vmatprep.subr.bf16.mxu0 %v920_v6  ;;  %904 = vmatprep.subr.bf16.mxu1 %v920_v6 }
  0x17   :  { %862 = vmatpush3.bf16.msra.mxu0 %v920_v6  ;;  %912 = vmatpush3.bf16.msra.mxu1 %v920_v6 }
  0x18   :  { %863 = vmatprep.subr.bf16.mxu0 %v921_v8  ;;  %905 = vmatprep.subr.bf16.mxu1 %v921_v8 }
  0x1b   :  { %864 = vmatpush3.bf16.msra.mxu0 %v921_v8  ;;  %913 = vmatpush3.bf16.msra.mxu1 %v921_v8 }
  0x1c   :  { %865 = vmatprep.subr.bf16.mxu0 %v922_v9  ;;  %906 = vmatprep.subr.bf16.mxu1 %v922_v9 }
  0x1f   :  { %866 = vmatpush3.bf16.msra.mxu0 %v922_v9  ;;  %914 = vmatpush3.bf16.msra.mxu1 %v922_v9 }
  0x22   :  { %868 = vmatmul.mubr.bf16.vlgmr.msra.gmra.mxu0 %v924_v10  ;;  %884 = vmatmul.mubr.bf16.vlgmr.msra.gmra.mxu1 %v932_v11 }
  0x23   :  { %871 = vmatprep.mubr.bf16.mxu0 %v925_v12  ;;  %887 = vmatprep.mubr.bf16.mxu1 %v933_v13 }
  0x2a   :  { %872 = vmatmul.mubr.bf16.gmra.mxu0 %v926_v14  ;;  %888 = vmatmul.mubr.bf16.gmra.mxu1 %v934_v15 }
  0x2b   :  { %875 = vmatprep.mubr.bf16.mxu0 %v927_v16  ;;  %891 = vmatprep.mubr.bf16.mxu1 %v935_v17 }
  0x32   :  { %876 = vmatmul.mubr.bf16.gmra.mxu0 %v928_v18  ;;  %892 = vmatmul.mubr.bf16.gmra.mxu1 %v936_v19 }
  0x33   :  { %879 = vmatprep.mubr.bf16.mxu0 %v929_v20  ;;  %895 = vmatprep.mubr.bf16.mxu1 %v937_v21 }
  0x3a   :  { %880 = vmatmul.mubr.bf16.gmra.mxu0 %v930_v22  ;;  %896 = vmatmul.mubr.bf16.gmra.mxu1 %v938_v23 }
  0xe2   :  { %v869_v24 = vpop.f32.mrf.mxu0  ;;  %v1031_v25 = vpop.f32.mrf.mxu1 }
  0xe3   :  { %v566_v41 = vmul.f32 %v869_v24, %v869_v24 }
  0xe4   :  { %v240_v26 = vpop.f32.mrf.mxu0  ;;  %v1033_v27 = vpop.f32.mrf.mxu1 }
  0xe5   :  { %v564_v32 = vmul.f32 %v240_v26, %v240_v26 }
  0xe6   :  { %v870_v28 = vpop.f32.mrf.mxu0  ;;  %v1035_v29 = vpop.f32.mrf.mxu1 }
  0xe7   :  { %v740_v30 = vpack.c.bf16 %v870_v28, %v869_v24  ;;  %v780_v31 = vpack.c.bf16 %v1035_v29, %v1031_v25  ;;  %v567_v46 = vmul.f32 %v870_v28, %v870_v28 }
  0xe8   :  { %v243_v33 = vpop.f32.mrf.mxu0  ;;  %v1039_v34 = vpop.f32.mrf.mxu1 }
  0xe9   :  { %812 = vst [vmem:[%s1174_s2 + $0x8] sm:$0xff] %v740_v30   ;;  %v735_v35 = vpack.c.bf16 %v243_v33, %v240_v26  ;;  %v527_v36 = vadd.f32 %v243_v33, %v240_v26  ;;  %v565_v37 = vmul.f32 %v243_v33, %v243_v33  ;;  %820 = vst [vmem:[%s1174_s2 + $0x48] sm:$0xff] %v780_v31  }
  0xea   :  { %v775_v38 = vpack.c.bf16 %v1039_v34, %v1033_v27  ;;  %v873_v39 = vpop.f32.mrf.mxu0  ;;  %v1049_v40 = vpop.f32.mrf.mxu1 }
  0xeb   :  { %736 = vst [vmem:[%s1174_s2] sm:$0xff] %v735_v35   ;;  %v528_v42 = vadd.f32 %v869_v24, %v527_v36  ;;  %v596_v43 = vadd.f32 %v565_v37, %v564_v32  ;;  %v570_v1 = vmul.f32 %v873_v39, %v873_v39 }
  0xec   :  { %819 = vst [vmem:[%s1174_s2 + $0x40] sm:$0xff] %v775_v38   ;;  %v256_v44 = vpop.f32.mrf.mxu0  ;;  %v1057_v45 = vpop.f32.mrf.mxu1 }
  0xed   :  { %v597_v47 = vadd.f32 %v596_v43, %v566_v41  ;;  %v529_v48 = vadd.f32 %v870_v28, %v528_v42  ;;  %v568_v52 = vmul.f32 %v256_v44, %v256_v44 }
  0xee   :  { %v874_v49 = vpop.f32.mrf.mxu0  ;;  %v1059_v50 = vpop.f32.mrf.mxu1 }
  0xef   :  { %v530_v51 = vadd.f32 %v529_v48, %v256_v44  ;;  %v598_v53 = vadd.f32 %v597_v47, %v567_v46  ;;  %v750_v54 = vpack.c.bf16 %v874_v49, %v873_v39  ;;  %v790_v56 = vpack.c.bf16 %v1059_v50, %v1049_v40 }
  0xf0   :  { %v259_v55 = vpop.f32.mrf.mxu0  ;;  %v1063_v57 = vpop.f32.mrf.mxu1  ;;  %v571_v6 = vmul.f32 %v874_v49, %v874_v49 }
  0xf1   :  { %v599_v58 = vadd.f32 %v598_v53, %v568_v52  ;;  %814 = vst [vmem:[%s1174_s2 + $0x18] sm:$0xff] %v750_v54   ;;  %v745_v59 = vpack.c.bf16 %v259_v55, %v256_v44  ;;  %v531_v60 = vadd.f32 %v530_v51, %v259_v55  ;;  %v569_v61 = vmul.f32 %v259_v55, %v259_v55 }
  0xf2   :  { %v877_v62 = vpop.f32.mrf.mxu0  ;;  %822 = vst [vmem:[%s1174_s2 + $0x58] sm:$0xff] %v790_v56   ;;  %v785_v63 = vpack.c.bf16 %v1063_v57, %v1057_v45  ;;  %v1073_v0 = vpop.f32.mrf.mxu1 }
  0xf3   :  { %813 = vst [vmem:[%s1174_s2 + $0x10] sm:$0xff] %v745_v59   ;;  %v532_v2 = vadd.f32 %v873_v39, %v531_v60  ;;  %v600_v3 = vadd.f32 %v599_v58, %v569_v61  ;;  %v574_v26 = vmul.f32 %v877_v62, %v877_v62  ;;  %v580_v61 = vmul.f32 %v1033_v27, %v1033_v27 }
  0xf4   :  { %v272_v4 = vpop.f32.mrf.mxu0  ;;  %821 = vst [vmem:[%s1174_s2 + $0x50] sm:$0xff] %v785_v63   ;;  %v1081_v5 = vpop.f32.mrf.mxu1 }
  0xf5   :  { %v601_v7 = vadd.f32 %v600_v3, %v570_v1  ;;  %v533_v8 = vadd.f32 %v874_v49, %v532_v2  ;;  %v572_v12 = vmul.f32 %v272_v4, %v272_v4  ;;  %v581_v2 = vmul.f32 %v1039_v34, %v1039_v34 }
  0xf6   :  { %v878_v9 = vpop.f32.mrf.mxu0  ;;  %v1083_v10 = vpop.f32.mrf.mxu1 }
  0xf7   :  { %v534_v11 = vadd.f32 %v533_v8, %v272_v4  ;;  %v602_v13 = vadd.f32 %v601_v7, %v571_v6  ;;  %v760_v14 = vpack.c.bf16 %v878_v9, %v877_v62  ;;  %v800_v16 = vpack.c.bf16 %v1083_v10, %v1073_v0 }
  0xf8   :  { %v275_v15 = vpop.f32.mrf.mxu0  ;;  %v1087_v17 = vpop.f32.mrf.mxu1  ;;  %v575_v33 = vmul.f32 %v878_v9, %v878_v9  ;;  %v583_v8 = vmul.f32 %v1035_v29, %v1035_v29 }
  0xf9   :  { %v603_v18 = vadd.f32 %v602_v13, %v572_v12  ;;  %816 = vst [vmem:[%s1174_s2 + $0x28] sm:$0xff] %v760_v14   ;;  %v755_v19 = vpack.c.bf16 %v275_v15, %v272_v4  ;;  %v535_v20 = vadd.f32 %v534_v11, %v275_v15  ;;  %v573_v21 = vmul.f32 %v275_v15, %v275_v15 }
  0xfa   :  { %v881_v22 = vpop.f32.mrf.mxu0  ;;  %824 = vst [vmem:[%s1174_s2 + $0x68] sm:$0xff] %v800_v16   ;;  %v795_v23 = vpack.c.bf16 %v1087_v17, %v1081_v5  ;;  %v1097_v24 = vpop.f32.mrf.mxu1  ;;  %v582_v4 = vmul.f32 %v1031_v25, %v1031_v25  ;;  %v584_v12 = vmul.f32 %v1057_v45, %v1057_v45  ;;  %v585_v15 = vmul.f32 %v1063_v57, %v1063_v57 }
  0xfb   :  { %815 = vst [vmem:[%s1174_s2 + $0x20] sm:$0xff] %v755_v19   ;;  %v536_v28 = vadd.f32 %v877_v62, %v535_v20  ;;  %v604_v30 = vadd.f32 %v603_v18, %v573_v21  ;;  %v578_v54 = vmul.f32 %v881_v22, %v881_v22  ;;  %v588_v21 = vmul.f32 %v1081_v5, %v1081_v5 }
  0xfc   :  { %v288_v31 = vpop.f32.mrf.mxu0  ;;  %823 = vst [vmem:[%s1174_s2 + $0x60] sm:$0xff] %v795_v23   ;;  %v1105_v32 = vpop.f32.mrf.mxu1 }
  0xfd   :  { %v605_v35 = vadd.f32 %v604_v30, %v574_v26  ;;  %v537_v36 = vadd.f32 %v878_v9, %v536_v28  ;;  %v576_v41 = vmul.f32 %v288_v31, %v288_v31  ;;  %v589_v26 = vmul.f32 %v1087_v17, %v1087_v17 }
  0xfe   :  { %v882_v37 = vpop.f32.mrf.mxu0  ;;  %v1107_v38 = vpop.f32.mrf.mxu1 }
  0xff   :  { %v538_v39 = vadd.f32 %v537_v36, %v288_v31  ;;  %v606_v42 = vadd.f32 %v605_v35, %v575_v33  ;;  %v770_v43 = vpack.c.bf16 %v882_v37, %v881_v22  ;;  %v810_v46 = vpack.c.bf16 %v1107_v38, %v1097_v24 }
 0x100   :  { %v291_v44 = vpop.f32.mrf.mxu0  ;;  %v355_v47 = vpop.f32.mrf.mxu1  ;;  %v579_v58 = vmul.f32 %v882_v37, %v882_v37  ;;  %v592_v35 = vmul.f32 %v1105_v32, %v1105_v32 }
 0x101   :  { %v607_v48 = vadd.f32 %v606_v42, %v576_v41  ;;  %818 = vst [vmem:[%s1174_s2 + $0x38] sm:$0xff] %v770_v43   ;;  %v765_v49 = vpack.c.bf16 %v291_v44, %v288_v31  ;;  %v539_v51 = vadd.f32 %v538_v39, %v291_v44  ;;  %v577_v52 = vmul.f32 %v291_v44, %v291_v44 }
 0x102   :  { %826 = vst [vmem:[%s1174_s2 + $0x78] sm:$0xff] %v810_v46   ;;  %v805_v53 = vpack.c.bf16 %v355_v47, %v1105_v32  ;;  %v593_v39 = vmul.f32 %v355_v47, %v355_v47  ;;  %v594_v41 = vmul.f32 %v1097_v24, %v1097_v24  ;;  %v595_v43 = vmul.f32 %v1107_v38, %v1107_v38 }
 0x103   :  { %817 = vst [vmem:[%s1174_s2 + $0x30] sm:$0xff] %v765_v49   ;;  %v540_v55 = vadd.f32 %v881_v22, %v539_v51  ;;  %v608_v56 = vadd.f32 %v607_v48, %v577_v52 }
 0x104   :  { %825 = vst [vmem:[%s1174_s2 + $0x70] sm:$0xff] %v805_v53  }
 0x105   :  { %v541_v59 = vadd.f32 %v882_v37, %v540_v55  ;;  %v609_v60 = vadd.f32 %v608_v56, %v578_v54 }
 0x107   :  { %v610_v62 = vadd.f32 %v609_v60, %v579_v58  ;;  %v542_v63 = vadd.f32 %v541_v59, %v1033_v27 }
 0x109   :  { %v543_v1 = vadd.f32 %v542_v63, %v1039_v34  ;;  %v611_v3 = vadd.f32 %v610_v62, %v580_v61 }
 0x10b   :  { %v544_v6 = vadd.f32 %v1031_v25, %v543_v1  ;;  %v612_v7 = vadd.f32 %v611_v3, %v581_v2  ;;  %v586_v25 = vmul.f32 %v1049_v40, %v1049_v40 }
 0x10d   :  { %v613_v9 = vadd.f32 %v612_v7, %v582_v4  ;;  %v545_v11 = vadd.f32 %v1035_v29, %v544_v6  ;;  %v587_v29 = vmul.f32 %v1059_v50, %v1059_v50 }
 0x10f   :  { %v546_v27 = vadd.f32 %v545_v11, %v1057_v45  ;;  %v614_v13 = vadd.f32 %v613_v9, %v583_v8 }
 0x111   :  { %v615_v34 = vadd.f32 %v614_v13, %v584_v12  ;;  %v547_v14 = vadd.f32 %v546_v27, %v1063_v57 }
 0x113   :  { %v548_v16 = vadd.f32 %v1049_v40, %v547_v14  ;;  %v616_v18 = vadd.f32 %v615_v34, %v585_v15  ;;  %v590_v40 = vmul.f32 %v1073_v0, %v1073_v0 }
 0x115   :  { %v617_v19 = vadd.f32 %v616_v18, %v586_v25  ;;  %v549_v20 = vadd.f32 %v1059_v50, %v548_v16  ;;  %v591_v50 = vmul.f32 %v1083_v10, %v1083_v10 }
 0x117   :  { %v550_v45 = vadd.f32 %v549_v20, %v1081_v5  ;;  %v618_v22 = vadd.f32 %v617_v19, %v587_v29 }
 0x119   :  { %v619_v23 = vadd.f32 %v618_v22, %v588_v21  ;;  %v551_v57 = vadd.f32 %v550_v45, %v1087_v17 }
 0x11b   :  { %v552_v28 = vadd.f32 %v1073_v0, %v551_v57  ;;  %v620_v30 = vadd.f32 %v619_v23, %v589_v26 }
 0x11d   :  { %v621_v31 = vadd.f32 %v620_v30, %v590_v40  ;;  %v553_v33 = vadd.f32 %v1083_v10, %v552_v28 }
 0x11f   :  { %v554_v5 = vadd.f32 %v553_v33, %v1105_v32  ;;  %v622_v36 = vadd.f32 %v621_v31, %v591_v50 }
 0x121   :  { %v623_v37 = vadd.f32 %v622_v36, %v592_v35  ;;  %v555_v17 = vadd.f32 %v554_v5, %v355_v47 }
 0x123   :  { %v556_v0 = vadd.f32 %v1097_v24, %v555_v17  ;;  %v624_v42 = vadd.f32 %v623_v37, %v593_v39 }
 0x125   :  { %v557_v10 = vadd.f32 %v1107_v38, %v556_v0  ;;  %v625_v44 = vadd.f32 %v624_v42, %v594_v41 }
 0x127   :  { %v558_v46 = vrot.slane %v557_v10, 4  ;;  %v626_v48 = vadd.f32 %v625_v44, %v595_v43 }
 0x129   :  { %v559_v49 = vadd.f32 %v558_v46, %v557_v10  ;;  %v627_v32 = vrot.slane %v626_v48, 4 }
 0x12b   :  { %v560_v51 = vrot.slane %v559_v49, 2  ;;  %v628_v52 = vadd.f32 %v627_v32, %v626_v48 }
 0x12d   :  { %v561_v53 = vadd.f32 %v560_v51, %v559_v49  ;;  %v629_v47 = vrot.slane %v628_v52, 2 }
 0x12f   :  { %v562_v54 = vrot.slane %v561_v53, 1  ;;  %v630_v55 = vadd.f32 %v629_v47, %v628_v52 }
 0x131   :  { %v631_v56 = vrot.slane %v630_v55, 1  ;;  %v563_v24 = vadd.f32 %v562_v54, %v561_v53 }
 0x133   :  { %v632_v58 = vadd.f32 %v631_v56, %v630_v55 }
 0x135   :  { %v634_v59 = vsel %vm633_vm0, %v563_v24, %v632_v58 }
 0x136   :  { %635 = vst [vmem:[%s1175_s3] sm:$0x3] %v634_v59 }

// kernel: basic_block_forward.7
= control target key start
LH: loop header
LB: loop body
LE: loop exit
PB: predicated region body
PF: predicated region fallthrough
CT: control target
= control target key end

     0   :  { %s1183_s0 = inlined_call_operand.vmem [shape: bf16[256,128], index: 0, kind: input, shape index: {}]   ;;  %s1184_s1 = inlined_call_operand.vmem [shape: f32[1,128], index: 1, kind: input, shape index: {}]   ;;  %s1185_s2 = inlined_call_operand.vmem [shape: f32[1,128], index: 2, kind: input, shape index: {}]   ;;  %s1186_s3 = inlined_call_operand.vmem [shape: bf16[256,128], index: 3, kind: input, shape index: {}]   ;;  %s1187_s4 = inlined_call_operand.vmem [shape: f32[1,128], index: 4, kind: input, shape index: {}]   ;;  %s1188_s5 = inlined_call_operand.vmem [shape: f32[1,128], index: 5, kind: input, shape index: {}]   ;;  %s1189_s6 = inlined_call_operand.vmem [shape: bf16[256,128], index: 6, kind: output, shape index: {}]  }
   0x1   :  { %v604_v0 = vld [vmem:[%s1183_s0] sm:$0xff]   ;;  %v811_v9 = vld [vmem:[%s1183_s0 + $0x8] sm:$0xff]   ;;  %v812_v15 = vld [vmem:[%s1183_s0 + $0x10] sm:$0xff]  }
   0x2   :  { %v897_v1 = vld [vmem:[%s1184_s1] ss:$0 sm:$0xff]  ;;  %v605_v2 = vunpack.c.l.bf16 %v604_v0  ;;  %v606_v3 = vunpack.c.h.bf16 %v604_v0  ;;  %v826_v10 = vld [vmem:[%s1186_s3 + $0x8] sm:$0xff]   ;;  %v609_v13 = vunpack.c.l.bf16 %v811_v9  ;;  %v610_v14 = vunpack.c.h.bf16 %v811_v9  ;;  %v827_v24 = vld [vmem:[%s1186_s3 + $0x10] sm:$0xff]  }
   0x3   :  { %v668_v4 = vld [vmem:[%s1186_s3] sm:$0xff]   ;;  %v673_v18 = vunpack.c.l.bf16 %v826_v10  ;;  %v674_v19 = vunpack.c.h.bf16 %v826_v10  ;;  %v613_v28 = vunpack.c.l.bf16 %v812_v15  ;;  %v614_v29 = vunpack.c.h.bf16 %v812_v15  ;;  %v813_v42 = vld [vmem:[%s1183_s0 + $0x18] sm:$0xff]   ;;  %v815_v9 = vld [vmem:[%s1183_s0 + $0x28] sm:$0xff]  }
   0x4   :  { %v905_v5 = vld [vmem:[%s1187_s4] ss:$0 sm:$0xff]  ;;  %v669_v7 = vunpack.c.l.bf16 %v668_v4  ;;  %v670_v8 = vunpack.c.h.bf16 %v668_v4  ;;  %v94_v11 = vmul.f32 %v605_v2, %v897_v1  ;;  %v95_v12 = vmul.f32 %v606_v3, %v897_v1  ;;  %v828_v47 = vld [vmem:[%s1186_s3 + $0x18] sm:$0xff]  }
   0x5   :  { %v910_v6 = vld [vmem:[%s1185_s2] ss:$0 sm:$0xff]  ;;  %v96_v22 = vmul.f32 %v609_v13, %v897_v1  ;;  %v97_v23 = vmul.f32 %v610_v14, %v897_v1  ;;  %v238_v26 = vmul.f32 %v673_v18, %v905_v5  ;;  %v239_v27 = vmul.f32 %v674_v19, %v905_v5 }
   0x6   :  { %v236_v16 = vmul.f32 %v669_v7, %v905_v5  ;;  %v237_v17 = vmul.f32 %v670_v8, %v905_v5  ;;  %v133_v20 = vadd.f32 %v910_v6, %v94_v11  ;;  %v134_v21 = vadd.f32 %v910_v6, %v95_v12  ;;  %v935_v25 = vld [vmem:[%s1188_s5] ss:$0 sm:$0xff] }
   0x7   :  { %v135_v32 = vadd.f32 %v910_v6, %v96_v22  ;;  %v136_v33 = vadd.f32 %v910_v6, %v97_v23  ;;  %v98_v34 = vmul.f32 %v613_v28, %v897_v1  ;;  %v99_v35 = vmul.f32 %v614_v29, %v897_v1  ;;  %v814_v56 = vld [vmem:[%s1183_s0 + $0x20] sm:$0xff]   ;;  %v830_v22 = vld [vmem:[%s1186_s3 + $0x28] sm:$0xff]  }
   0x8   :  { %v268_v30 = vadd.f32 %v236_v16, %v133_v20  ;;  %v269_v31 = vadd.f32 %v237_v17, %v134_v21  ;;  %v677_v36 = vunpack.c.l.bf16 %v827_v24  ;;  %v678_v37 = vunpack.c.h.bf16 %v827_v24  ;;  %v829_v2 = vld [vmem:[%s1186_s3 + $0x20] sm:$0xff]  }
   0x9   :  { %v270_v40 = vadd.f32 %v238_v26, %v135_v32  ;;  %v271_v41 = vadd.f32 %v239_v27, %v136_v33  ;;  %v137_v43 = vadd.f32 %v910_v6, %v98_v34  ;;  %v138_v44 = vadd.f32 %v910_v6, %v99_v35 }
   0xa   :  { %v307_v38 = vadd.f32 %v935_v25, %v268_v30  ;;  %v308_v39 = vadd.f32 %v935_v25, %v269_v31  ;;  %v240_v45 = vmul.f32 %v677_v36, %v905_v5  ;;  %v241_v46 = vmul.f32 %v678_v37, %v905_v5  ;;  %v816_v36 = vld [vmem:[%s1183_s0 + $0x30] sm:$0xff]  }
   0xb   :  { %v309_v50 = vadd.f32 %v935_v25, %v270_v40  ;;  %v310_v51 = vadd.f32 %v935_v25, %v271_v41  ;;  %v617_v54 = vunpack.c.l.bf16 %v813_v42  ;;  %v618_v55 = vunpack.c.h.bf16 %v813_v42 }
   0xc   :  { %v339_v48 = vmax.f32 %v307_v38, 0.0  ;;  %v340_v49 = vmax.f32 %v308_v39, 0.0  ;;  %v272_v52 = vadd.f32 %v240_v45, %v137_v43  ;;  %v273_v53 = vadd.f32 %v241_v46, %v138_v44  ;;  %v831_v45 = vld [vmem:[%s1186_s3 + $0x30] sm:$0xff]  }
   0xd   :  { %v341_v58 = vmax.f32 %v309_v50, 0.0  ;;  %v342_v59 = vmax.f32 %v310_v51, 0.0  ;;  %v681_v60 = vunpack.c.l.bf16 %v828_v47  ;;  %v100_v63 = vmul.f32 %v617_v54, %v897_v1  ;;  %v817_v50 = vld [vmem:[%s1183_s0 + $0x38] sm:$0xff]  }
   0xe   :  { %v734_v57 = vpack.c.bf16 %v340_v49, %v339_v48  ;;  %v311_v61 = vadd.f32 %v935_v25, %v272_v52  ;;  %v312_v62 = vadd.f32 %v935_v25, %v273_v53  ;;  %v101_v0 = vmul.f32 %v618_v55, %v897_v1 }
   0xf   :  { %v739_v3 = vpack.c.bf16 %v342_v59, %v341_v58  ;;  %v682_v4 = vunpack.c.h.bf16 %v828_v47  ;;  %v242_v7 = vmul.f32 %v681_v60, %v905_v5  ;;  %v621_v8 = vunpack.c.l.bf16 %v814_v56 }
  0x10   :  { %735 = vst [vmem:[%s1189_s6] sm:$0xff] %v734_v57   ;;  %v343_v10 = vmax.f32 %v311_v61, 0.0  ;;  %v344_v11 = vmax.f32 %v312_v62, 0.0  ;;  %v139_v12 = vadd.f32 %v910_v6, %v100_v63  ;;  %v140_v13 = vadd.f32 %v910_v6, %v101_v0  ;;  %v832_v63 = vld [vmem:[%s1186_s3 + $0x38] sm:$0xff]  }
  0x11   :  { %841 = vst [vmem:[%s1189_s6 + $0x8] sm:$0xff] %v739_v3   ;;  %v243_v14 = vmul.f32 %v682_v4, %v905_v5  ;;  %v622_v15 = vunpack.c.h.bf16 %v814_v56  ;;  %v102_v16 = vmul.f32 %v621_v8, %v897_v1  ;;  %v685_v17 = vunpack.c.l.bf16 %v829_v2 }
  0x12   :  { %v744_v18 = vpack.c.bf16 %v344_v11, %v343_v10  ;;  %v274_v19 = vadd.f32 %v242_v7, %v139_v12  ;;  %v686_v20 = vunpack.c.h.bf16 %v829_v2  ;;  %v625_v21 = vunpack.c.l.bf16 %v815_v9  ;;  %v818_v7 = vld [vmem:[%s1183_s0 + $0x40] sm:$0xff]  }
  0x13   :  { %v275_v23 = vadd.f32 %v243_v14, %v140_v13  ;;  %v103_v24 = vmul.f32 %v622_v15, %v897_v1  ;;  %v141_v26 = vadd.f32 %v910_v6, %v102_v16  ;;  %v244_v27 = vmul.f32 %v685_v17, %v905_v5 }
  0x14   :  { %842 = vst [vmem:[%s1189_s6 + $0x10] sm:$0xff] %v744_v18   ;;  %v313_v28 = vadd.f32 %v935_v25, %v274_v19  ;;  %v245_v29 = vmul.f32 %v686_v20, %v905_v5  ;;  %v626_v30 = vunpack.c.h.bf16 %v815_v9  ;;  %v104_v31 = vmul.f32 %v625_v21, %v897_v1  ;;  %v833_v20 = vld [vmem:[%s1186_s3 + $0x40] sm:$0xff]  }
  0x15   :  { %v314_v32 = vadd.f32 %v935_v25, %v275_v23  ;;  %v142_v33 = vadd.f32 %v910_v6, %v103_v24  ;;  %v276_v34 = vadd.f32 %v244_v27, %v141_v26  ;;  %v689_v35 = vunpack.c.l.bf16 %v830_v22 }
  0x16   :  { %v345_v37 = vmax.f32 %v313_v28, 0.0  ;;  %v105_v38 = vmul.f32 %v626_v30, %v897_v1  ;;  %v143_v39 = vadd.f32 %v910_v6, %v104_v31  ;;  %v690_v40 = vunpack.c.h.bf16 %v830_v22  ;;  %v819_v30 = vld [vmem:[%s1183_s0 + $0x48] sm:$0xff]  }
  0x17   :  { %v346_v41 = vmax.f32 %v314_v32, 0.0  ;;  %v277_v42 = vadd.f32 %v245_v29, %v142_v33  ;;  %v315_v43 = vadd.f32 %v935_v25, %v276_v34  ;;  %v246_v44 = vmul.f32 %v689_v35, %v905_v5 }
  0x18   :  { %v144_v46 = vadd.f32 %v910_v6, %v105_v38  ;;  %v247_v47 = vmul.f32 %v690_v40, %v905_v5  ;;  %v629_v48 = vunpack.c.l.bf16 %v816_v36  ;;  %v630_v49 = vunpack.c.h.bf16 %v816_v36 }
  0x19   :  { %v749_v51 = vpack.c.bf16 %v346_v41, %v345_v37  ;;  %v316_v52 = vadd.f32 %v935_v25, %v277_v42  ;;  %v347_v53 = vmax.f32 %v315_v43, 0.0  ;;  %v278_v54 = vadd.f32 %v246_v44, %v143_v39  ;;  %v834_v43 = vld [vmem:[%s1186_s3 + $0x48] sm:$0xff]  }
  0x1a   :  { %v279_v55 = vadd.f32 %v247_v47, %v144_v46  ;;  %v106_v56 = vmul.f32 %v629_v48, %v897_v1  ;;  %v107_v57 = vmul.f32 %v630_v49, %v897_v1  ;;  %v693_v58 = vunpack.c.l.bf16 %v831_v45  ;;  %v820_v48 = vld [vmem:[%s1183_s0 + $0x50] sm:$0xff]  }
  0x1b   :  { %843 = vst [vmem:[%s1189_s6 + $0x18] sm:$0xff] %v749_v51   ;;  %v348_v59 = vmax.f32 %v316_v52, 0.0  ;;  %v317_v60 = vadd.f32 %v935_v25, %v278_v54  ;;  %v694_v61 = vunpack.c.h.bf16 %v831_v45  ;;  %v633_v62 = vunpack.c.l.bf16 %v817_v50 }
  0x1c   :  { %v318_v0 = vadd.f32 %v935_v25, %v279_v55  ;;  %v145_v2 = vadd.f32 %v910_v6, %v106_v56  ;;  %v146_v3 = vadd.f32 %v910_v6, %v107_v57  ;;  %v248_v4 = vmul.f32 %v693_v58, %v905_v5 }
  0x1d   :  { %v754_v8 = vpack.c.bf16 %v348_v59, %v347_v53  ;;  %v349_v9 = vmax.f32 %v317_v60, 0.0  ;;  %v249_v10 = vmul.f32 %v694_v61, %v905_v5  ;;  %v634_v11 = vunpack.c.h.bf16 %v817_v50  ;;  %v835_v61 = vld [vmem:[%s1186_s3 + $0x50] sm:$0xff]  }
  0x1e   :  { %v350_v12 = vmax.f32 %v318_v0, 0.0  ;;  %v280_v13 = vadd.f32 %v248_v4, %v145_v2  ;;  %v108_v14 = vmul.f32 %v633_v62, %v897_v1  ;;  %v697_v15 = vunpack.c.l.bf16 %v832_v63 }
  0x1f   :  { %844 = vst [vmem:[%s1189_s6 + $0x20] sm:$0xff] %v754_v8   ;;  %v281_v16 = vadd.f32 %v249_v10, %v146_v3  ;;  %v109_v17 = vmul.f32 %v634_v11, %v897_v1  ;;  %v698_v18 = vunpack.c.h.bf16 %v832_v63  ;;  %v637_v19 = vunpack.c.l.bf16 %v818_v7  ;;  %v821_v3 = vld [vmem:[%s1183_s0 + $0x58] sm:$0xff]  }
  0x20   :  { %v759_v21 = vpack.c.bf16 %v350_v12, %v349_v9  ;;  %v319_v22 = vadd.f32 %v935_v25, %v280_v13  ;;  %v147_v23 = vadd.f32 %v910_v6, %v108_v14  ;;  %v250_v24 = vmul.f32 %v697_v15, %v905_v5 }
  0x21   :  { %v320_v26 = vadd.f32 %v935_v25, %v281_v16  ;;  %v148_v27 = vadd.f32 %v910_v6, %v109_v17  ;;  %v251_v28 = vmul.f32 %v698_v18, %v905_v5  ;;  %v638_v29 = vunpack.c.h.bf16 %v818_v7  ;;  %v836_v18 = vld [vmem:[%s1186_s3 + $0x58] sm:$0xff]  }
  0x22   :  { %845 = vst [vmem:[%s1189_s6 + $0x28] sm:$0xff] %v759_v21   ;;  %v351_v31 = vmax.f32 %v319_v22, 0.0  ;;  %v282_v32 = vadd.f32 %v250_v24, %v147_v23  ;;  %v110_v33 = vmul.f32 %v637_v19, %v897_v1  ;;  %v701_v34 = vunpack.c.l.bf16 %v833_v20 }
  0x23   :  { %v352_v35 = vmax.f32 %v320_v26, 0.0  ;;  %v283_v36 = vadd.f32 %v251_v28, %v148_v27  ;;  %v111_v37 = vmul.f32 %v638_v29, %v897_v1  ;;  %v702_v38 = vunpack.c.h.bf16 %v833_v20  ;;  %v822_v28 = vld [vmem:[%s1183_s0 + $0x60] sm:$0xff]  }
  0x24   :  { %v321_v39 = vadd.f32 %v935_v25, %v282_v32  ;;  %v149_v40 = vadd.f32 %v910_v6, %v110_v33  ;;  %v252_v41 = vmul.f32 %v701_v34, %v905_v5  ;;  %v641_v42 = vunpack.c.l.bf16 %v819_v30 }
  0x25   :  { %v764_v44 = vpack.c.bf16 %v352_v35, %v351_v31  ;;  %v322_v45 = vadd.f32 %v935_v25, %v283_v36  ;;  %v150_v46 = vadd.f32 %v910_v6, %v111_v37  ;;  %v253_v47 = vmul.f32 %v702_v38, %v905_v5  ;;  %v837_v37 = vld [vmem:[%s1186_s3 + $0x60] sm:$0xff]  }
  0x26   :  { %v353_v49 = vmax.f32 %v321_v39, 0.0  ;;  %v284_v50 = vadd.f32 %v252_v41, %v149_v40  ;;  %v642_v51 = vunpack.c.h.bf16 %v819_v30  ;;  %v112_v52 = vmul.f32 %v641_v42, %v897_v1 }
  0x27   :  { %846 = vst [vmem:[%s1189_s6 + $0x30] sm:$0xff] %v764_v44   ;;  %v354_v53 = vmax.f32 %v322_v45, 0.0  ;;  %v285_v54 = vadd.f32 %v253_v47, %v150_v46  ;;  %v705_v55 = vunpack.c.l.bf16 %v834_v43  ;;  %v706_v56 = vunpack.c.h.bf16 %v834_v43  ;;  %v823_v46 = vld [vmem:[%s1183_s0 + $0x68] sm:$0xff]  }
  0x28   :  { %v323_v57 = vadd.f32 %v935_v25, %v284_v50  ;;  %v113_v58 = vmul.f32 %v642_v51, %v897_v1  ;;  %v151_v59 = vadd.f32 %v910_v6, %v112_v52  ;;  %v645_v60 = vunpack.c.l.bf16 %v820_v48 }
  0x29   :  { %v769_v62 = vpack.c.bf16 %v354_v53, %v353_v49  ;;  %v324_v63 = vadd.f32 %v935_v25, %v285_v54  ;;  %v254_v0 = vmul.f32 %v705_v55, %v905_v5  ;;  %v255_v2 = vmul.f32 %v706_v56, %v905_v5 }
  0x2a   :  { %v355_v4 = vmax.f32 %v323_v57, 0.0  ;;  %v152_v7 = vadd.f32 %v910_v6, %v113_v58  ;;  %v646_v8 = vunpack.c.h.bf16 %v820_v48  ;;  %v114_v9 = vmul.f32 %v645_v60, %v897_v1 }
  0x2b   :  { %847 = vst [vmem:[%s1189_s6 + $0x38] sm:$0xff] %v769_v62   ;;  %v356_v10 = vmax.f32 %v324_v63, 0.0  ;;  %v286_v11 = vadd.f32 %v254_v0, %v151_v59  ;;  %v709_v12 = vunpack.c.l.bf16 %v835_v61  ;;  %v710_v13 = vunpack.c.h.bf16 %v835_v61  ;;  %v838_v59 = vld [vmem:[%s1186_s3 + $0x68] sm:$0xff]   ;;  %v824_v0 = vld [vmem:[%s1183_s0 + $0x70] sm:$0xff]  }
  0x2c   :  { %v287_v14 = vadd.f32 %v255_v2, %v152_v7  ;;  %v115_v15 = vmul.f32 %v646_v8, %v897_v1  ;;  %v153_v16 = vadd.f32 %v910_v6, %v114_v9  ;;  %v649_v17 = vunpack.c.l.bf16 %v821_v3 }
  0x2d   :  { %v774_v19 = vpack.c.bf16 %v356_v10, %v355_v4  ;;  %v325_v20 = vadd.f32 %v935_v25, %v286_v11  ;;  %v256_v21 = vmul.f32 %v709_v12, %v905_v5  ;;  %v257_v22 = vmul.f32 %v710_v13, %v905_v5 }
  0x2e   :  { %v326_v23 = vadd.f32 %v935_v25, %v287_v14  ;;  %v154_v24 = vadd.f32 %v910_v6, %v115_v15  ;;  %v650_v26 = vunpack.c.h.bf16 %v821_v3  ;;  %v116_v27 = vmul.f32 %v649_v17, %v897_v1 }
  0x2f   :  { %848 = vst [vmem:[%s1189_s6 + $0x40] sm:$0xff] %v774_v19   ;;  %v357_v29 = vmax.f32 %v325_v20, 0.0  ;;  %v288_v30 = vadd.f32 %v256_v21, %v153_v16  ;;  %v713_v31 = vunpack.c.l.bf16 %v836_v18  ;;  %v714_v32 = vunpack.c.h.bf16 %v836_v18  ;;  %v839_v16 = vld [vmem:[%s1186_s3 + $0x70] sm:$0xff]   ;;  %v825_v21 = vld [vmem:[%s1183_s0 + $0x78] sm:$0xff]  }
  0x30   :  { %v358_v33 = vmax.f32 %v326_v23, 0.0  ;;  %v289_v34 = vadd.f32 %v257_v22, %v154_v24  ;;  %v117_v35 = vmul.f32 %v650_v26, %v897_v1  ;;  %v155_v36 = vadd.f32 %v910_v6, %v116_v27 }
  0x31   :  { %v327_v38 = vadd.f32 %v935_v25, %v288_v30  ;;  %v258_v39 = vmul.f32 %v713_v31, %v905_v5  ;;  %v259_v40 = vmul.f32 %v714_v32, %v905_v5  ;;  %v653_v41 = vunpack.c.l.bf16 %v822_v28 }
  0x32   :  { %v779_v42 = vpack.c.bf16 %v358_v33, %v357_v29  ;;  %v328_v43 = vadd.f32 %v935_v25, %v289_v34  ;;  %v156_v44 = vadd.f32 %v910_v6, %v117_v35  ;;  %v654_v45 = vunpack.c.h.bf16 %v822_v28  ;;  %v840_v35 = vld [vmem:[%s1186_s3 + $0x78] sm:$0xff]  }
  0x33   :  { %v359_v47 = vmax.f32 %v327_v38, 0.0  ;;  %v290_v48 = vadd.f32 %v258_v39, %v155_v36  ;;  %v118_v49 = vmul.f32 %v653_v41, %v897_v1  ;;  %v717_v50 = vunpack.c.l.bf16 %v837_v37 }
  0x34   :  { %849 = vst [vmem:[%s1189_s6 + $0x48] sm:$0xff] %v779_v42   ;;  %v360_v51 = vmax.f32 %v328_v43, 0.0  ;;  %v291_v52 = vadd.f32 %v259_v40, %v156_v44  ;;  %v119_v53 = vmul.f32 %v654_v45, %v897_v1  ;;  %v718_v54 = vunpack.c.h.bf16 %v837_v37 }
  0x35   :  { %v329_v55 = vadd.f32 %v935_v25, %v290_v48  ;;  %v157_v56 = vadd.f32 %v910_v6, %v118_v49  ;;  %v260_v57 = vmul.f32 %v717_v50, %v905_v5  ;;  %v657_v58 = vunpack.c.l.bf16 %v823_v46 }
  0x36   :  { %v784_v60 = vpack.c.bf16 %v360_v51, %v359_v47  ;;  %v330_v61 = vadd.f32 %v935_v25, %v291_v52  ;;  %v158_v62 = vadd.f32 %v910_v6, %v119_v53  ;;  %v261_v63 = vmul.f32 %v718_v54, %v905_v5 }
  0x37   :  { %v361_v2 = vmax.f32 %v329_v55, 0.0  ;;  %v292_v3 = vadd.f32 %v260_v57, %v157_v56  ;;  %v658_v4 = vunpack.c.h.bf16 %v823_v46  ;;  %v120_v7 = vmul.f32 %v657_v58, %v897_v1 }
  0x38   :  { %850 = vst [vmem:[%s1189_s6 + $0x50] sm:$0xff] %v784_v60   ;;  %v362_v8 = vmax.f32 %v330_v61, 0.0  ;;  %v293_v9 = vadd.f32 %v261_v63, %v158_v62  ;;  %v721_v10 = vunpack.c.l.bf16 %v838_v59  ;;  %v722_v11 = vunpack.c.h.bf16 %v838_v59 }
  0x39   :  { %v331_v12 = vadd.f32 %v935_v25, %v292_v3  ;;  %v121_v13 = vmul.f32 %v658_v4, %v897_v1  ;;  %v159_v14 = vadd.f32 %v910_v6, %v120_v7  ;;  %v661_v15 = vunpack.c.l.bf16 %v824_v0 }
  0x3a   :  { %v789_v17 = vpack.c.bf16 %v362_v8, %v361_v2  ;;  %v332_v18 = vadd.f32 %v935_v25, %v293_v9  ;;  %v262_v19 = vmul.f32 %v721_v10, %v905_v5  ;;  %v263_v20 = vmul.f32 %v722_v11, %v905_v5 }
  0x3b   :  { %v363_v22 = vmax.f32 %v331_v12, 0.0  ;;  %v160_v23 = vadd.f32 %v910_v6, %v121_v13  ;;  %v662_v24 = vunpack.c.h.bf16 %v824_v0  ;;  %v122_v26 = vmul.f32 %v661_v15, %v897_v1 }
  0x3c   :  { %851 = vst [vmem:[%s1189_s6 + $0x58] sm:$0xff] %v789_v17   ;;  %v364_v27 = vmax.f32 %v332_v18, 0.0  ;;  %v294_v28 = vadd.f32 %v262_v19, %v159_v14  ;;  %v725_v29 = vunpack.c.l.bf16 %v839_v16  ;;  %v726_v30 = vunpack.c.h.bf16 %v839_v16 }
  0x3d   :  { %v295_v31 = vadd.f32 %v263_v20, %v160_v23  ;;  %v123_v32 = vmul.f32 %v662_v24, %v897_v1  ;;  %v161_v33 = vadd.f32 %v910_v6, %v122_v26  ;;  %v665_v34 = vunpack.c.l.bf16 %v825_v21 }
  0x3e   :  { %v794_v36 = vpack.c.bf16 %v364_v27, %v363_v22  ;;  %v333_v37 = vadd.f32 %v935_v25, %v294_v28  ;;  %v264_v38 = vmul.f32 %v725_v29, %v905_v5  ;;  %v265_v39 = vmul.f32 %v726_v30, %v905_v5 }
  0x3f   :  { %v334_v40 = vadd.f32 %v935_v25, %v295_v31  ;;  %v162_v41 = vadd.f32 %v910_v6, %v123_v32  ;;  %v666_v42 = vunpack.c.h.bf16 %v825_v21  ;;  %v124_v43 = vmul.f32 %v665_v34, %v897_v1 }
  0x40   :  { %852 = vst [vmem:[%s1189_s6 + $0x60] sm:$0xff] %v794_v36   ;;  %v365_v44 = vmax.f32 %v333_v37, 0.0  ;;  %v296_v45 = vadd.f32 %v264_v38, %v161_v33  ;;  %v729_v46 = vunpack.c.l.bf16 %v840_v35  ;;  %v730_v47 = vunpack.c.h.bf16 %v840_v35 }
  0x41   :  { %v366_v48 = vmax.f32 %v334_v40, 0.0  ;;  %v297_v49 = vadd.f32 %v265_v39, %v162_v41  ;;  %v125_v50 = vmul.f32 %v666_v42, %v897_v1  ;;  %v163_v51 = vadd.f32 %v910_v6, %v124_v43 }
  0x42   :  { %v335_v52 = vadd.f32 %v935_v25, %v296_v45  ;;  %v266_v53 = vmul.f32 %v729_v46, %v905_v5  ;;  %v267_v54 = vmul.f32 %v730_v47, %v905_v5 }
  0x43   :  { %v799_v55 = vpack.c.bf16 %v366_v48, %v365_v44  ;;  %v336_v56 = vadd.f32 %v935_v25, %v297_v49  ;;  %v164_v57 = vadd.f32 %v910_v6, %v125_v50 }
  0x44   :  { %v367_v58 = vmax.f32 %v335_v52, 0.0  ;;  %v298_v59 = vadd.f32 %v266_v53, %v163_v51 }
  0x45   :  { %853 = vst [vmem:[%s1189_s6 + $0x68] sm:$0xff] %v799_v55   ;;  %v368_v1 = vmax.f32 %v336_v56, 0.0  ;;  %v299_v60 = vadd.f32 %v267_v54, %v164_v57 }
  0x46   :  { %v337_v61 = vadd.f32 %v935_v25, %v298_v59 }
  0x47   :  { %v804_v62 = vpack.c.bf16 %v368_v1, %v367_v58  ;;  %v338_v63 = vadd.f32 %v935_v25, %v299_v60 }
  0x48   :  { %v369_v0 = vmax.f32 %v337_v61, 0.0 }
  0x49   :  { %854 = vst [vmem:[%s1189_s6 + $0x70] sm:$0xff] %v804_v62   ;;  %v370_v5 = vmax.f32 %v338_v63, 0.0 }
  0x4b   :  { %v809_v6 = vpack.c.bf16 %v370_v5, %v369_v0 }
  0x4d   :  { %855 = vst [vmem:[%s1189_s6 + $0x78] sm:$0xff] %v809_v6  }

</bundles_post_ra>
